<compile_context>
chip_gen: v7x
topology: tpu7x:2x2x1
jax: 0.10.0
libtpu: 0.0.40
codegen_flags: <defaults>
</compile_context>

<pallas_src>
import functools

import jax
import jax.numpy as jnp
from jax import lax
from jax.experimental import pallas as pl
from jax.experimental.pallas import tpu as pltpu


def _warp_kernel(*refs, H, W, k_tile, compute_dtype, need_label):
    """Warp one batch element: one output-pixel tile x one input-pixel chunk.

    refs (need_label=True):
      base_ref : (2, T)        base output-pixel coords (row 0: H, row 1: W)
      img_ref  : (1, C, K)     image chunk (input pixels k*K .. k*K+K-1), compute_dtype
      lbl_ref  : (1, CL, K)    label chunk, float32
      flow_ref : (1, 2, T)     flow tile (channel 0 = H disp, 1 = W disp)
      out_img_ref : (1, C, T)  bilinear-warped image tile
      out_lbl_ref : (1, CL, T) nearest-warped label tile (float32)
      acc_img_ref : (C, T)     f32 scratch accumulator
      acc_lbl_ref : (CL, T)    f32 scratch accumulator
    """
    if need_label:
        (base_ref, img_ref, lbl_ref, flow_ref,
         out_img_ref, out_lbl_ref, acc_img_ref, acc_lbl_ref) = refs
    else:
        base_ref, img_ref, flow_ref, out_img_ref, acc_img_ref = refs
        lbl_ref = out_lbl_ref = acc_lbl_ref = None

    f32 = jnp.float32
    k = pl.program_id(2)
    nk = pl.num_programs(2)

    @pl.when(k == 0)
    def _():
        acc_img_ref[...] = jnp.zeros_like(acc_img_ref)
        if need_label:
            acc_lbl_ref[...] = jnp.zeros_like(acc_lbl_ref)

    p_h = base_ref[0:1, :]                       # (1, T) f32
    p_w = base_ref[1:2, :]
    fy = flow_ref[0, 0:1, :].astype(f32)         # flow along H
    fx = flow_ref[0, 1:2, :].astype(f32)         # flow along W

    # align_corners=True, same-size output: normalize/denormalize is identity.
    ys = p_h + fy
    xs = p_w + fx

    x0f = jnp.floor(xs)
    y0f = jnp.floor(ys)
    dx = xs - x0f
    dy = ys - y0f
    x0 = x0f.astype(jnp.int32)
    y0 = y0f.astype(jnp.int32)
    x1 = x0 + 1
    y1 = y0 + 1

    # flat input index per corner; -1 (never matched) encodes zeros padding
    def flat_idx(yc, xc):
        inb = (xc >= 0) & (xc < W) & (yc >= 0) & (yc < H)
        return jnp.where(inb, yc * W + xc, -1)                  # (1, T) i32

    # global input-pixel index for this K-chunk, as a column iota
    q = lax.broadcasted_iota(jnp.int32, (k_tile, 1), 0) + k * k_tile

    w_nw = (1.0 - dx) * (1.0 - dy)
    w_ne = dx * (1.0 - dy)
    w_sw = (1.0 - dx) * dy
    w_se = dx * dy
    zero = jnp.zeros((), f32)

    # Fused one-pass bilinear sampling matrix (K, T): accumulator stays in
    # vregs, single store pass (the 4 corner flat indices are always distinct).
    m_bi = (jnp.where(q == flat_idx(y0, x0), w_nw, zero)
            + jnp.where(q == flat_idx(y0, x1), w_ne, zero)
            + jnp.where(q == flat_idx(y1, x0), w_sw, zero)
            + jnp.where(q == flat_idx(y1, x1), w_se, zero))

    # (C, K) @ (K, T) on the MXU, f32 accumulation
    acc_img_ref[...] += jnp.dot(img_ref[0], m_bi.astype(compute_dtype),
                                preferred_element_type=f32)

    if need_label:
        # Nearest 0/1 sampling matrix: ONE compare against the rounded index.
        xn = jnp.round(xs).astype(jnp.int32)
        yn = jnp.round(ys).astype(jnp.int32)
        m_nn = (q == flat_idx(yn, xn)).astype(f32)
        acc_lbl_ref[...] += jnp.dot(lbl_ref[0], m_nn,
                                    preferred_element_type=f32)

    @pl.when(k == nk - 1)
    def _():
        out_img_ref[0] = acc_img_ref[...].astype(out_img_ref.dtype)
        if need_label:
            out_lbl_ref[0] = acc_lbl_ref[...].astype(out_lbl_ref.dtype)


def _pick_tiles(hw_pad, temp_budget_bytes):
    """Pick (t_out, k_tile): multiples of 128 dividing hw_pad, preferring a
    wide output tile (256+ fills the 256-lane MXU / amortizes grid-step
    overhead) while keeping the (K_TILE, T_OUT) mask temporaries in budget."""
    t_cands = [d for d in (1024, 512, 256, 128) if hw_pad % d == 0] or [hw_pad]
    k_cands = [d for d in (2048, 1024, 512, 256, 128) if hw_pad % d == 0] or [hw_pad]
    for t in t_cands:
        for kt in k_cands:
            # ~6 live (K, T) f32-sized temporaries during the fused mask build
            if 6 * kt * t * 4 <= temp_budget_bytes:
                return t, kt
    return t_cands[-1], k_cands[-1]


def _vmem_limit_bytes(c, cl, t, k, img_itemsize):
    f32b = 4
    # double-buffered BlockSpec windows
    blocks = 2 * (2 * t * f32b            # base-grid tile
                  + c * k * img_itemsize  # image K-chunk
                  + cl * k * f32b         # label K-chunk (0 if no label)
                  + 2 * t * f32b          # flow tile
                  + c * t * f32b          # image output tile
                  + cl * t * f32b)        # label output tile
    scratch = (c + cl) * t * f32b
    # in-kernel temporaries: fused mask build (~6 f32 copies) + one bf16 cast
    temps = 6 * k * t * f32b + k * t * 2
    total = blocks + scratch + temps + (4 << 20)
    cap = 96 << 20
    try:  # never request more scoped VMEM than the chip has (v7x: 64 MiB)
        cap = int(pltpu.get_tpu_info().vmem_capacity_bytes * 3 // 4)
    except Exception:
        pass
    return int(min(max(total, 16 << 20), cap))


def spatial_transformer_double(image, label, flow, need_moved_label=True, *,
                               t_out=None, k_tile=None,
                               compute_dtype=jnp.bfloat16,
                               temp_budget_bytes=16 << 20):
    """JAX/Pallas equivalent of SpatialTransformerDouble.forward (2-D case).

    image: (N, C, H, W) float          -> bilinear warp (zeros padding)
    label: (N, CL, H, W) any dtype     -> nearest warp as float32 (or None)
    flow : (N, 2, H, W) float          (channel 0 = H disp, channel 1 = W disp)

    compute_dtype: dtype of the image/bilinear-mask MXU operands
      (bf16 default = fast MXU path; the label matmul stays f32 so the
      nearest warp is exact for any label magnitude).
    """
    N, C, H, W = image.shape
    CL = label.shape[1]
    HW = H * W

    # pad the flattened pixel axis to a lane multiple (zeros; sliced off below)
    HW_pad = ((HW + 127) // 128) * 128
    pad = HW_pad - HW

    if t_out is None or k_tile is None:
        auto_t, auto_k = _pick_tiles(HW_pad, temp_budget_bytes)
        t_out = auto_t if t_out is None else t_out
        k_tile = auto_k if k_tile is None else k_tile
    assert HW_pad % t_out == 0 and t_out % 128 == 0, \
        "t_out must divide padded H*W and be a multiple of 128"
    assert HW_pad % k_tile == 0 and k_tile % 128 == 0, \
        "k_tile must divide padded H*W and be a multiple of 128"
    n_tiles = HW_pad // t_out
    n_k = HW_pad // k_tile

    img_f = image.astype(compute_dtype).reshape(N, C, HW)
    flw_f = flow.astype(jnp.float32).reshape(N, 2, HW)

    # Base sampling grid (same role as the module's registered `grid` buffer).
    bh, bw = jnp.meshgrid(jnp.arange(H, dtype=jnp.float32),
                          jnp.arange(W, dtype=jnp.float32), indexing="ij")
    base = jnp.stack([bh, bw]).reshape(2, HW)

    if pad:
        img_f = jnp.pad(img_f, ((0, 0), (0, 0), (0, pad)))
        flw_f = jnp.pad(flw_f, ((0, 0), (0, 0), (0, pad)))
        base = jnp.pad(base, ((0, 0), (0, pad)))

    in_specs = [
        pl.BlockSpec((2, t_out), lambda b, t, k: (0, t)),          # base grid tile
        pl.BlockSpec((1, C, k_tile), lambda b, t, k: (b, 0, k)),   # image K-chunk
    ]
    inputs = [base, img_f]
    out_shape = [jax.ShapeDtypeStruct((N, C, HW_pad), image.dtype)]
    out_specs = [pl.BlockSpec((1, C, t_out), lambda b, t, k: (b, 0, t))]
    scratch = [pltpu.VMEM((C, t_out), jnp.float32)]

    if need_moved_label:
        lbl_f = label.astype(jnp.float32).reshape(N, CL, HW)
        if pad:
            lbl_f = jnp.pad(lbl_f, ((0, 0), (0, 0), (0, pad)))
        in_specs.append(pl.BlockSpec((1, CL, k_tile), lambda b, t, k: (b, 0, k)))
        inputs.append(lbl_f)
        out_shape.append(jax.ShapeDtypeStruct((N, CL, HW_pad), jnp.float32))
        out_specs.append(pl.BlockSpec((1, CL, t_out), lambda b, t, k: (b, 0, t)))
        scratch.append(pltpu.VMEM((CL, t_out), jnp.float32))

    in_specs.append(pl.BlockSpec((1, 2, t_out), lambda b, t, k: (b, 0, t)))  # flow
    inputs.append(flw_f)

    kernel = functools.partial(
        _warp_kernel, H=H, W=W, k_tile=k_tile,
        compute_dtype=compute_dtype, need_label=need_moved_label)

    vmem_limit = _vmem_limit_bytes(
        C, CL if need_moved_label else 0, t_out, k_tile,
        jnp.dtype(compute_dtype).itemsize)

    outs = pl.pallas_call(
        kernel,
        out_shape=tuple(out_shape),
        grid=(N, n_tiles, n_k),
        in_specs=in_specs,
        out_specs=tuple(out_specs),
        scratch_shapes=scratch,
        compiler_params=pltpu.CompilerParams(
            dimension_semantics=("parallel", "parallel", "arbitrary"),
            vmem_limit_bytes=vmem_limit,
        ),
    )(*inputs)

    if need_moved_label:
        warp_img_f, warp_lbl_f = outs
    else:
        warp_img_f = outs[0] if isinstance(outs, (tuple, list)) else outs
        warp_lbl_f = None

    warp_image = warp_img_f[:, :, :HW].reshape(N, C, H, W)
    warp_label = (warp_lbl_f[:, :, :HW].reshape(N, CL, H, W)
                  if need_moved_label else None)
    return warp_image, warp_label


def _reference_warp(image, label, flow):
    """Pure-JAX reference of grid_sample(bilinear/nearest, zeros, align_corners=True)."""
    N, C, H, W = image.shape
    ii = jnp.arange(H, dtype=jnp.float32)[:, None]
    jj = jnp.arange(W, dtype=jnp.float32)[None, :]
    ys = ii + flow[:, 0]
    xs = jj + flow[:, 1]
    gy = 2.0 * (ys / (H - 1) - 0.5)
    gx = 2.0 * (xs / (W - 1) - 0.5)
    ys = (gy + 1.0) * 0.5 * (H - 1)
    xs = (gx + 1.0) * 0.5 * (W - 1)

    def gather(img, yi, xi):
        n, c = img.shape[:2]
        inb = (xi >= 0) & (xi < W) & (yi >= 0) & (yi < H)
        yc = jnp.clip(yi, 0, H - 1).astype(jnp.int32)
        xc = jnp.clip(xi, 0, W - 1).astype(jnp.int32)
        flat = (yc * W + xc).reshape(n, 1, H * W)
        g = jnp.take_along_axis(img.reshape(n, c, H * W),
                                jnp.broadcast_to(flat, (n, c, H * W)), axis=2)
        return g.reshape(n, c, H, W) * inb[:, None].astype(img.dtype)

    x0 = jnp.floor(xs); y0 = jnp.floor(ys)
    x1 = x0 + 1.0;      y1 = y0 + 1.0
    w_nw = (x1 - xs) * (y1 - ys)
    w_ne = (xs - x0) * (y1 - ys)
    w_sw = (x1 - xs) * (ys - y0)
    w_se = (xs - x0) * (ys - y0)
    warp_img = (gather(image, y0, x0) * w_nw[:, None] +
                gather(image, y0, x1) * w_ne[:, None] +
                gather(image, y1, x0) * w_sw[:, None] +
                gather(image, y1, x1) * w_se[:, None])
    yn = jnp.round(ys); xn = jnp.round(xs)
    warp_lbl = gather(label.astype(jnp.float32), yn, xn)
    return warp_img, warp_lbl


if __name__ == "__main__":
    key = jax.random.PRNGKey(0)
    k_img, k_lbl, k_flow = jax.random.split(key, 3)

    N, C, CL, H, W = 2, 4, 1, 16, 16
    image = jax.random.normal(k_img, (N, C, H, W), dtype=jnp.float32)
    label = jax.random.randint(k_lbl, (N, CL, H, W), 0, 5).astype(jnp.float32)
    # moderate flow so some samples fall out of bounds (tests zeros padding)
    flow = 3.0 * jax.random.normal(k_flow, (N, 2, H, W), dtype=jnp.float32)

    ref_img, ref_lbl = _reference_warp(image, label, flow)

    # f32 path; grid (N, HW/128, HW/128) = (2, 2, 2) exercises the K-chunked
    # accumulator and the multi-tile output.
    wi, wl = spatial_transformer_double(image, label, flow, t_out=128, k_tile=128,
                                        compute_dtype=jnp.float32)
    wi = jax.block_until_ready(wi)
    wl = jax.block_until_ready(wl)
    assert wi.shape == (N, C, H, W) and wl.shape == (N, CL, H, W)
    assert jnp.allclose(wi, ref_img, atol=1e-4), "bilinear warp mismatch (f32)"
    assert jnp.allclose(wl, ref_lbl, atol=1e-4), "nearest warp mismatch (f32)"

    # default bf16 MXU path (nearest stays exact: f32 label matmul)
    wi_bf, wl_bf = spatial_transformer_double(image, label, flow,
                                              t_out=128, k_tile=128)
    wi_bf = jax.block_until_ready(wi_bf)
    wl_bf = jax.block_until_ready(wl_bf)
    assert jnp.allclose(wi_bf, ref_img, atol=5e-2), "bilinear warp mismatch (bf16)"
    assert jnp.allclose(wl_bf, ref_lbl, atol=1e-4), "nearest warp mismatch (bf16)"

    # need_moved_label=False specialization (drops label stream/matmul/output)
    wi_only, wl_none = spatial_transformer_double(image, label, flow,
                                                  need_moved_label=False,
                                                  t_out=128, k_tile=128,
                                                  compute_dtype=jnp.float32)
    wi_only = jax.block_until_ready(wi_only)
    assert wl_none is None
    assert jnp.allclose(wi_only, ref_img, atol=1e-4), "bilinear warp mismatch (img only)"

    # non-128-aligned spatial size exercises the HW padding path
    H2, W2 = 10, 12
    image2 = jax.random.normal(k_img, (N, C, H2, W2), dtype=jnp.float32)
    label2 = jax.random.randint(k_lbl, (N, CL, H2, W2), 0, 5).astype(jnp.float32)
    flow2 = 2.0 * jax.random.normal(k_flow, (N, 2, H2, W2), dtype=jnp.float32)
    ref_img2, ref_lbl2 = _reference_warp(image2, label2, flow2)
    wi2, wl2 = spatial_transformer_double(image2, label2, flow2,
                                          compute_dtype=jnp.float32)
    wi2 = jax.block_until_ready(wi2)
    wl2 = jax.block_until_ready(wl2)
    assert jnp.allclose(wi2, ref_img2, atol=1e-4), "bilinear warp mismatch (padded)"
    assert jnp.allclose(wl2, ref_lbl2, atol=1e-4), "nearest warp mismatch (padded)"

    print("KERNEL_OK")
</pallas_src>

<mosaic_0001>
module attributes {stable_mosaic.version = 11 : i64} {
  func.func @_warp_kernel(%arg0: i32, %arg1: i32, %arg2: i32, %arg3: memref<2x128xf32, #tpu.memory_space<vmem>>, %arg4: memref<1x4x128xf32, #tpu.memory_space<vmem>>, %arg5: memref<1x1x128xf32, #tpu.memory_space<vmem>>, %arg6: memref<1x2x128xf32, #tpu.memory_space<vmem>>, %arg7: memref<1x4x128xf32, #tpu.memory_space<vmem>>, %arg8: memref<1x1x128xf32, #tpu.memory_space<vmem>>, %arg9: memref<4x128xf32, #tpu.memory_space<vmem>>, %arg10: memref<1x128xf32, #tpu.memory_space<vmem>>) attributes {dimension_semantics = [#tpu.dimension_semantics<parallel>, #tpu.dimension_semantics<parallel>, #tpu.dimension_semantics<arbitrary>], iteration_bounds = array<i64: 2, 2, 2>, scalar_prefetch = 0 : i64, scratch_operands = 2 : i64, tpu.core_type = #tpu.core_type<tc>, window_params = [{transform_indices = @transform_0, window_bounds = array<i64: 2, 128>}, {transform_indices = @transform_1, window_bounds = array<i64: 1, 4, 128>}, {transform_indices = @transform_2, window_bounds = array<i64: 1, 1, 128>}, {transform_indices = @transform_3, window_bounds = array<i64: 1, 2, 128>}, {transform_indices = @transform_4, window_bounds = array<i64: 1, 4, 128>}, {transform_indices = @transform_5, window_bounds = array<i64: 1, 1, 128>}]} {
    %c0_i32 = arith.constant 0 : i32
    %0 = arith.cmpi eq, %arg2, %c0_i32 : i32
    %1 = arith.extui %0 : i1 to i32
    %c0_i32_0 = arith.constant 0 : i32
    %2 = arith.cmpi ne, %1, %c0_i32_0 : i32
    scf.if %2 {
      %cst_63 = arith.constant 0.000000e+00 : f32
      %172 = vector.broadcast %cst_63 : f32 to vector<4x128xf32>
      %c0_64 = arith.constant 0 : index
      %c0_65 = arith.constant 0 : index
      %173 = vector.load %arg9[%c0_64, %c0_65] : memref<4x128xf32, #tpu.memory_space<vmem>>, vector<4x128xf32>
      tpu.vector_store %arg9[%c0_64, %c0_65], %172 {strides = array<i32>} : memref<4x128xf32, #tpu.memory_space<vmem>>, vector<4x128xf32>,
      %cst_66 = arith.constant 0.000000e+00 : f32
      %174 = vector.broadcast %cst_66 : f32 to vector<1x128xf32>
      %c0_67 = arith.constant 0 : index
      %c0_68 = arith.constant 0 : index
      %175 = vector.load %arg10[%c0_67, %c0_68] : memref<1x128xf32, #tpu.memory_space<vmem>>, vector<1x128xf32>
      tpu.vector_store %arg10[%c0_67, %c0_68], %174 {strides = array<i32>} : memref<1x128xf32, #tpu.memory_space<vmem>>, vector<1x128xf32>,
    } else {
    }
    %c0 = arith.constant 0 : index
    %c0_1 = arith.constant 0 : index
    %3 = vector.load %arg3[%c0, %c0_1] : memref<2x128xf32, #tpu.memory_space<vmem>>, vector<1x128xf32>
    %c1 = arith.constant 1 : index
    %c0_2 = arith.constant 0 : index
    %4 = vector.load %arg3[%c1, %c0_2] : memref<2x128xf32, #tpu.memory_space<vmem>>, vector<1x128xf32>
    %c0_3 = arith.constant 0 : index
    %c0_4 = arith.constant 0 : index
    %c0_5 = arith.constant 0 : index
    %5 = vector.load %arg6[%c0_3, %c0_4, %c0_5] : memref<1x2x128xf32, #tpu.memory_space<vmem>>, vector<1x1x128xf32>
    %6 = vector.shape_cast %5 : vector<1x1x128xf32> to vector<1x128xf32>
    %c0_6 = arith.constant 0 : index
    %c1_7 = arith.constant 1 : index
    %c0_8 = arith.constant 0 : index
    %7 = vector.load %arg6[%c0_6, %c1_7, %c0_8] : memref<1x2x128xf32, #tpu.memory_space<vmem>>, vector<1x1x128xf32>
    %8 = vector.shape_cast %7 : vector<1x1x128xf32> to vector<1x128xf32>
    %9 = arith.addf %3, %6 : vector<1x128xf32>
    %10 = arith.addf %4, %8 : vector<1x128xf32>
    %11 = math.floor %10 : vector<1x128xf32>
    %12 = math.floor %9 : vector<1x128xf32>
    %13 = arith.subf %10, %11 : vector<1x128xf32>
    %14 = arith.subf %9, %12 : vector<1x128xf32>
    %15 = arith.fptosi %11 : vector<1x128xf32> to vector<1x128xi32>
    %16 = arith.fptosi %12 : vector<1x128xf32> to vector<1x128xi32>
    %c1_i32 = arith.constant 1 : i32
    %17 = vector.broadcast %c1_i32 : i32 to vector<1x128xi32>
    %18 = arith.addi %15, %17 : vector<1x128xi32>
    %c1_i32_9 = arith.constant 1 : i32
    %19 = vector.broadcast %c1_i32_9 : i32 to vector<1x128xi32>
    %20 = arith.addi %16, %19 : vector<1x128xi32>
    %21 = tpu.iota {dimensions = array<i32: 0>} : vector<128x1xi32>
    %c128_i32 = arith.constant 128 : i32
    %22 = arith.muli %arg2, %c128_i32 : i32
    %23 = vector.broadcast %22 : i32 to vector<128x1xi32>
    %24 = arith.addi %21, %23 : vector<128x1xi32>
    %cst = arith.constant 1.000000e+00 : f32
    %25 = vector.broadcast %cst : f32 to vector<1x128xf32>
    %26 = arith.subf %25, %13 : vector<1x128xf32>
    %cst_10 = arith.constant 1.000000e+00 : f32
    %27 = vector.broadcast %cst_10 : f32 to vector<1x128xf32>
    %28 = arith.subf %27, %14 : vector<1x128xf32>
    %29 = arith.mulf %26, %28 : vector<1x128xf32>
    %cst_11 = arith.constant 1.000000e+00 : f32
    %30 = vector.broadcast %cst_11 : f32 to vector<1x128xf32>
    %31 = arith.subf %30, %14 : vector<1x128xf32>
    %32 = arith.mulf %13, %31 : vector<1x128xf32>
    %cst_12 = arith.constant 1.000000e+00 : f32
    %33 = vector.broadcast %cst_12 : f32 to vector<1x128xf32>
    %34 = arith.subf %33, %13 : vector<1x128xf32>
    %35 = arith.mulf %34, %14 : vector<1x128xf32>
    %36 = arith.mulf %13, %14 : vector<1x128xf32>
    %c0_i32_13 = arith.constant 0 : i32
    %37 = vector.broadcast %c0_i32_13 : i32 to vector<1x128xi32>
    %38 = arith.cmpi sge, %15, %37 : vector<1x128xi32>
    %c16_i32 = arith.constant 16 : i32
    %39 = vector.broadcast %c16_i32 : i32 to vector<1x128xi32>
    %40 = arith.cmpi slt, %15, %39 : vector<1x128xi32>
    %41 = arith.andi %38, %40 : vector<1x128xi1>
    %c0_i32_14 = arith.constant 0 : i32
    %42 = vector.broadcast %c0_i32_14 : i32 to vector<1x128xi32>
    %43 = arith.cmpi sge, %16, %42 : vector<1x128xi32>
    %44 = arith.andi %41, %43 : vector<1x128xi1>
    %c16_i32_15 = arith.constant 16 : i32
    %45 = vector.broadcast %c16_i32_15 : i32 to vector<1x128xi32>
    %46 = arith.cmpi slt, %16, %45 : vector<1x128xi32>
    %47 = arith.andi %44, %46 : vector<1x128xi1>
    %c16_i32_16 = arith.constant 16 : i32
    %48 = vector.broadcast %c16_i32_16 : i32 to vector<1x128xi32>
    %49 = arith.muli %16, %48 : vector<1x128xi32>
    %50 = arith.addi %49, %15 : vector<1x128xi32>
    %c-1_i32 = arith.constant -1 : i32
    %51 = vector.broadcast %c-1_i32 : i32 to vector<1x128xi32>
    %52 = arith.select %47, %50, %51 : vector<1x128xi1>, vector<1x128xi32>
    %53 = vector.broadcast %24 : vector<128x1xi32> to vector<128x128xi32>
    %54 = vector.broadcast %52 : vector<1x128xi32> to vector<128x128xi32>
    %55 = arith.cmpi eq, %53, %54 : vector<128x128xi32>
    %cst_17 = arith.constant 0.000000e+00 : f32
    %56 = vector.shape_cast %29 : vector<1x128xf32> to vector<1x128xf32>
    %57 = vector.broadcast %56 : vector<1x128xf32> to vector<128x128xf32>
    %58 = vector.broadcast %cst_17 : f32 to vector<128x128xf32>
    %59 = arith.select %55, %57, %58 : vector<128x128xi1>, vector<128x128xf32>
    %c0_i32_18 = arith.constant 0 : i32
    %60 = vector.broadcast %c0_i32_18 : i32 to vector<1x128xi32>
    %61 = arith.cmpi sge, %18, %60 : vector<1x128xi32>
    %c16_i32_19 = arith.constant 16 : i32
    %62 = vector.broadcast %c16_i32_19 : i32 to vector<1x128xi32>
    %63 = arith.cmpi slt, %18, %62 : vector<1x128xi32>
    %64 = arith.andi %61, %63 : vector<1x128xi1>
    %c0_i32_20 = arith.constant 0 : i32
    %65 = vector.broadcast %c0_i32_20 : i32 to vector<1x128xi32>
    %66 = arith.cmpi sge, %16, %65 : vector<1x128xi32>
    %67 = arith.andi %64, %66 : vector<1x128xi1>
    %c16_i32_21 = arith.constant 16 : i32
    %68 = vector.broadcast %c16_i32_21 : i32 to vector<1x128xi32>
    %69 = arith.cmpi slt, %16, %68 : vector<1x128xi32>
    %70 = arith.andi %67, %69 : vector<1x128xi1>
    %c16_i32_22 = arith.constant 16 : i32
    %71 = vector.broadcast %c16_i32_22 : i32 to vector<1x128xi32>
    %72 = arith.muli %16, %71 : vector<1x128xi32>
    %73 = arith.addi %72, %18 : vector<1x128xi32>
    %c-1_i32_23 = arith.constant -1 : i32
    %74 = vector.broadcast %c-1_i32_23 : i32 to vector<1x128xi32>
    %75 = arith.select %70, %73, %74 : vector<1x128xi1>, vector<1x128xi32>
    %76 = vector.broadcast %24 : vector<128x1xi32> to vector<128x128xi32>
    %77 = vector.broadcast %75 : vector<1x128xi32> to vector<128x128xi32>
    %78 = arith.cmpi eq, %76, %77 : vector<128x128xi32>
    %cst_24 = arith.constant 0.000000e+00 : f32
    %79 = vector.shape_cast %32 : vector<1x128xf32> to vector<1x128xf32>
    %80 = vector.broadcast %79 : vector<1x128xf32> to vector<128x128xf32>
    %81 = vector.broadcast %cst_24 : f32 to vector<128x128xf32>
    %82 = arith.select %78, %80, %81 : vector<128x128xi1>, vector<128x128xf32>
    %83 = arith.addf %59, %82 : vector<128x128xf32>
    %c0_i32_25 = arith.constant 0 : i32
    %84 = vector.broadcast %c0_i32_25 : i32 to vector<1x128xi32>
    %85 = arith.cmpi sge, %15, %84 : vector<1x128xi32>
    %c16_i32_26 = arith.constant 16 : i32
    %86 = vector.broadcast %c16_i32_26 : i32 to vector<1x128xi32>
    %87 = arith.cmpi slt, %15, %86 : vector<1x128xi32>
    %88 = arith.andi %85, %87 : vector<1x128xi1>
    %c0_i32_27 = arith.constant 0 : i32
    %89 = vector.broadcast %c0_i32_27 : i32 to vector<1x128xi32>
    %90 = arith.cmpi sge, %20, %89 : vector<1x128xi32>
    %91 = arith.andi %88, %90 : vector<1x128xi1>
    %c16_i32_28 = arith.constant 16 : i32
    %92 = vector.broadcast %c16_i32_28 : i32 to vector<1x128xi32>
    %93 = arith.cmpi slt, %20, %92 : vector<1x128xi32>
    %94 = arith.andi %91, %93 : vector<1x128xi1>
    %c16_i32_29 = arith.constant 16 : i32
    %95 = vector.broadcast %c16_i32_29 : i32 to vector<1x128xi32>
    %96 = arith.muli %20, %95 : vector<1x128xi32>
    %97 = arith.addi %96, %15 : vector<1x128xi32>
    %c-1_i32_30 = arith.constant -1 : i32
    %98 = vector.broadcast %c-1_i32_30 : i32 to vector<1x128xi32>
    %99 = arith.select %94, %97, %98 : vector<1x128xi1>, vector<1x128xi32>
    %100 = vector.broadcast %24 : vector<128x1xi32> to vector<128x128xi32>
    %101 = vector.broadcast %99 : vector<1x128xi32> to vector<128x128xi32>
    %102 = arith.cmpi eq, %100, %101 : vector<128x128xi32>
    %cst_31 = arith.constant 0.000000e+00 : f32
    %103 = vector.shape_cast %35 : vector<1x128xf32> to vector<1x128xf32>
    %104 = vector.broadcast %103 : vector<1x128xf32> to vector<128x128xf32>
    %105 = vector.broadcast %cst_31 : f32 to vector<128x128xf32>
    %106 = arith.select %102, %104, %105 : vector<128x128xi1>, vector<128x128xf32>
    %107 = arith.addf %83, %106 : vector<128x128xf32>
    %c0_i32_32 = arith.constant 0 : i32
    %108 = vector.broadcast %c0_i32_32 : i32 to vector<1x128xi32>
    %109 = arith.cmpi sge, %18, %108 : vector<1x128xi32>
    %c16_i32_33 = arith.constant 16 : i32
    %110 = vector.broadcast %c16_i32_33 : i32 to vector<1x128xi32>
    %111 = arith.cmpi slt, %18, %110 : vector<1x128xi32>
    %112 = arith.andi %109, %111 : vector<1x128xi1>
    %c0_i32_34 = arith.constant 0 : i32
    %113 = vector.broadcast %c0_i32_34 : i32 to vector<1x128xi32>
    %114 = arith.cmpi sge, %20, %113 : vector<1x128xi32>
    %115 = arith.andi %112, %114 : vector<1x128xi1>
    %c16_i32_35 = arith.constant 16 : i32
    %116 = vector.broadcast %c16_i32_35 : i32 to vector<1x128xi32>
    %117 = arith.cmpi slt, %20, %116 : vector<1x128xi32>
    %118 = arith.andi %115, %117 : vector<1x128xi1>
    %c16_i32_36 = arith.constant 16 : i32
    %119 = vector.broadcast %c16_i32_36 : i32 to vector<1x128xi32>
    %120 = arith.muli %20, %119 : vector<1x128xi32>
    %121 = arith.addi %120, %18 : vector<1x128xi32>
    %c-1_i32_37 = arith.constant -1 : i32
    %122 = vector.broadcast %c-1_i32_37 : i32 to vector<1x128xi32>
    %123 = arith.select %118, %121, %122 : vector<1x128xi1>, vector<1x128xi32>
    %124 = vector.broadcast %24 : vector<128x1xi32> to vector<128x128xi32>
    %125 = vector.broadcast %123 : vector<1x128xi32> to vector<128x128xi32>
    %126 = arith.cmpi eq, %124, %125 : vector<128x128xi32>
    %cst_38 = arith.constant 0.000000e+00 : f32
    %127 = vector.shape_cast %36 : vector<1x128xf32> to vector<1x128xf32>
    %128 = vector.broadcast %127 : vector<1x128xf32> to vector<128x128xf32>
    %129 = vector.broadcast %cst_38 : f32 to vector<128x128xf32>
    %130 = arith.select %126, %128, %129 : vector<128x128xi1>, vector<128x128xf32>
    %131 = arith.addf %107, %130 : vector<128x128xf32>
    %c0_39 = arith.constant 0 : index
    %c0_40 = arith.constant 0 : index
    %132 = vector.load %arg9[%c0_39, %c0_40] : memref<4x128xf32, #tpu.memory_space<vmem>>, vector<4x128xf32>
    %c0_41 = arith.constant 0 : index
    %c0_42 = arith.constant 0 : index
    %c0_43 = arith.constant 0 : index
    %133 = vector.load %arg4[%c0_41, %c0_42, %c0_43] : memref<1x4x128xf32, #tpu.memory_space<vmem>>, vector<1x4x128xf32>
    %134 = vector.shape_cast %133 : vector<1x4x128xf32> to vector<4x128xf32>
    %cst_44 = arith.constant dense<0.000000e+00> : vector<4x128xf32>
    %135 = tpu.matmul %134, %131, %cst_44 {dimension_numbers = #tpu.dot_dimension_numbers<[1], [0], [0], [1], [0, 0, 1, 1], [], []>} : vector<4x128xf32>, vector<128x128xf32>, vector<4x128xf32> -> vector<4x128xf32>
    %136 = arith.addf %132, %135 : vector<4x128xf32>
    %c0_45 = arith.constant 0 : index
    %c0_46 = arith.constant 0 : index
    %137 = vector.load %arg9[%c0_45, %c0_46] : memref<4x128xf32, #tpu.memory_space<vmem>>, vector<4x128xf32>
    tpu.vector_store %arg9[%c0_45, %c0_46], %136 {strides = array<i32>} : memref<4x128xf32, #tpu.memory_space<vmem>>, vector<4x128xf32>,
    %138 = math.roundeven %10 : vector<1x128xf32>
    %139 = arith.fptosi %138 : vector<1x128xf32> to vector<1x128xi32>
    %140 = math.roundeven %9 : vector<1x128xf32>
    %141 = arith.fptosi %140 : vector<1x128xf32> to vector<1x128xi32>
    %c0_i32_47 = arith.constant 0 : i32
    %142 = vector.broadcast %c0_i32_47 : i32 to vector<1x128xi32>
    %143 = arith.cmpi sge, %139, %142 : vector<1x128xi32>
    %c16_i32_48 = arith.constant 16 : i32
    %144 = vector.broadcast %c16_i32_48 : i32 to vector<1x128xi32>
    %145 = arith.cmpi slt, %139, %144 : vector<1x128xi32>
    %146 = arith.andi %143, %145 : vector<1x128xi1>
    %c0_i32_49 = arith.constant 0 : i32
    %147 = vector.broadcast %c0_i32_49 : i32 to vector<1x128xi32>
    %148 = arith.cmpi sge, %141, %147 : vector<1x128xi32>
    %149 = arith.andi %146, %148 : vector<1x128xi1>
    %c16_i32_50 = arith.constant 16 : i32
    %150 = vector.broadcast %c16_i32_50 : i32 to vector<1x128xi32>
    %151 = arith.cmpi slt, %141, %150 : vector<1x128xi32>
    %152 = arith.andi %149, %151 : vector<1x128xi1>
    %c16_i32_51 = arith.constant 16 : i32
    %153 = vector.broadcast %c16_i32_51 : i32 to vector<1x128xi32>
    %154 = arith.muli %141, %153 : vector<1x128xi32>
    %155 = arith.addi %154, %139 : vector<1x128xi32>
    %c-1_i32_52 = arith.constant -1 : i32
    %156 = vector.broadcast %c-1_i32_52 : i32 to vector<1x128xi32>
    %157 = arith.select %152, %155, %156 : vector<1x128xi1>, vector<1x128xi32>
    %158 = vector.broadcast %24 : vector<128x1xi32> to vector<128x128xi32>
    %159 = vector.broadcast %157 : vector<1x128xi32> to vector<128x128xi32>
    %160 = arith.cmpi eq, %158, %159 : vector<128x128xi32>
    %161 = arith.extui %160 : vector<128x128xi1> to vector<128x128xi32>
    %162 = arith.sitofp %161 : vector<128x128xi32> to vector<128x128xf32>
    %c0_53 = arith.constant 0 : index
    %c0_54 = arith.constant 0 : index
    %163 = vector.load %arg10[%c0_53, %c0_54] : memref<1x128xf32, #tpu.memory_space<vmem>>, vector<1x128xf32>
    %c0_55 = arith.constant 0 : index
    %c0_56 = arith.constant 0 : index
    %c0_57 = arith.constant 0 : index
    %164 = vector.load %arg5[%c0_55, %c0_56, %c0_57] : memref<1x1x128xf32, #tpu.memory_space<vmem>>, vector<1x1x128xf32>
    %165 = vector.shape_cast %164 : vector<1x1x128xf32> to vector<1x128xf32>
    %cst_58 = arith.constant dense<0.000000e+00> : vector<1x128xf32>
    %166 = tpu.matmul %165, %162, %cst_58 {dimension_numbers = #tpu.dot_dimension_numbers<[1], [0], [0], [1], [0, 0, 1, 1], [], []>} : vector<1x128xf32>, vector<128x128xf32>, vector<1x128xf32> -> vector<1x128xf32>
    %167 = arith.addf %163, %166 : vector<1x128xf32>
    %c0_59 = arith.constant 0 : index
    %c0_60 = arith.constant 0 : index
    %168 = vector.load %arg10[%c0_59, %c0_60] : memref<1x128xf32, #tpu.memory_space<vmem>>, vector<1x128xf32>
    tpu.vector_store %arg10[%c0_59, %c0_60], %167 {strides = array<i32>} : memref<1x128xf32, #tpu.memory_space<vmem>>, vector<1x128xf32>,
    %c1_i32_61 = arith.constant 1 : i32
    %169 = arith.cmpi eq, %arg2, %c1_i32_61 : i32
    %170 = arith.extui %169 : i1 to i32
    %c0_i32_62 = arith.constant 0 : i32
    %171 = arith.cmpi ne, %170, %c0_i32_62 : i32
    scf.if %171 {
      %c0_63 = arith.constant 0 : index
      %c0_64 = arith.constant 0 : index
      %172 = vector.load %arg9[%c0_63, %c0_64] : memref<4x128xf32, #tpu.memory_space<vmem>>, vector<4x128xf32>
      %c0_65 = arith.constant 0 : index
      %c0_66 = arith.constant 0 : index
      %c0_67 = arith.constant 0 : index
      %173 = vector.load %arg7[%c0_65, %c0_66, %c0_67] : memref<1x4x128xf32, #tpu.memory_space<vmem>>, vector<1x4x128xf32>
      %174 = vector.shape_cast %173 : vector<1x4x128xf32> to vector<4x128xf32>
      %175 = vector.shape_cast %172 : vector<4x128xf32> to vector<1x4x128xf32>
      tpu.vector_store %arg7[%c0_65, %c0_66, %c0_67], %175 {strides = array<i32>} : memref<1x4x128xf32, #tpu.memory_space<vmem>>, vector<1x4x128xf32>,
      %c0_68 = arith.constant 0 : index
      %c0_69 = arith.constant 0 : index
      %176 = vector.load %arg10[%c0_68, %c0_69] : memref<1x128xf32, #tpu.memory_space<vmem>>, vector<1x128xf32>
      %c0_70 = arith.constant 0 : index
      %c0_71 = arith.constant 0 : index
      %c0_72 = arith.constant 0 : index
      %177 = vector.load %arg8[%c0_70, %c0_71, %c0_72] : memref<1x1x128xf32, #tpu.memory_space<vmem>>, vector<1x1x128xf32>
      %178 = vector.shape_cast %177 : vector<1x1x128xf32> to vector<1x128xf32>
      %179 = vector.shape_cast %176 : vector<1x128xf32> to vector<1x1x128xf32>
      tpu.vector_store %arg8[%c0_70, %c0_71, %c0_72], %179 {strides = array<i32>} : memref<1x1x128xf32, #tpu.memory_space<vmem>>, vector<1x1x128xf32>,
    } else {
    }
    return
  }
  func.func @transform_0(%arg0: i32, %arg1: i32, %arg2: i32) -> (i32, i32) {
    %c0_i32 = arith.constant 0 : i32
    %c0_i32_0 = arith.constant 0 : i32
    return %c0_i32, %arg1 : i32, i32
  }
  func.func @transform_1(%arg0: i32, %arg1: i32, %arg2: i32) -> (i32, i32, i32) {
    %c0_i32 = arith.constant 0 : i32
    %c0_i32_0 = arith.constant 0 : i32
    return %arg0, %c0_i32, %arg2 : i32, i32, i32
  }
  func.func @transform_2(%arg0: i32, %arg1: i32, %arg2: i32) -> (i32, i32, i32) {
    %c0_i32 = arith.constant 0 : i32
    %c0_i32_0 = arith.constant 0 : i32
    return %arg0, %c0_i32, %arg2 : i32, i32, i32
  }
  func.func @transform_3(%arg0: i32, %arg1: i32, %arg2: i32) -> (i32, i32, i32) {
    %c0_i32 = arith.constant 0 : i32
    %c0_i32_0 = arith.constant 0 : i32
    return %arg0, %c0_i32, %arg1 : i32, i32, i32
  }
  func.func @transform_4(%arg0: i32, %arg1: i32, %arg2: i32) -> (i32, i32, i32) {
    %c0_i32 = arith.constant 0 : i32
    %c0_i32_0 = arith.constant 0 : i32
    return %arg0, %c0_i32, %arg1 : i32, i32, i32
  }
  func.func @transform_5(%arg0: i32, %arg1: i32, %arg2: i32) -> (i32, i32, i32) {
    %c0_i32 = arith.constant 0 : i32
    %c0_i32_0 = arith.constant 0 : i32
    return %arg0, %c0_i32, %arg1 : i32, i32, i32
  }
}

</mosaic_0001>

<bundles_post_ra>
// kernel: tpu_custom_call.1
= control target key start
LH: loop header
LB: loop body
LE: loop exit
PB: predicated region body
PF: predicated region fallthrough
CT: control target
= control target key end

     0   :  { %s2623_s0 = inlined_call_operand.hbm [shape: f32[2,256], index: 0, kind: input, shape index: {}]   ;;  %s2624_s1 = inlined_call_operand.hbm [shape: f32[2,4,256], index: 1, kind: input, shape index: {}]   ;;  %s2625_s2 = inlined_call_operand.hbm [shape: f32[2,1,256], index: 2, kind: input, shape index: {}]   ;;  %s2626_s3 = inlined_call_operand.vmem [shape: f32[2,2,256], index: 3, kind: input, shape index: {}]   ;;  %s2627_s4 = inlined_call_operand.hbm [shape: f32[2,4,256], index: 4, kind: output, shape index: {0}]   ;;  %s2628_s5 = inlined_call_operand.hbm [shape: f32[2,1,256], index: 5, kind: output, shape index: {1}]  }
   0x1   :  { %2654 = sst [smem:[#allocation31_spill]] %s2624_s1 }
   0x2   :  { %2655 = sst [smem:[#allocation32_spill]] %s2626_s3 }
   0x3   :  { %2656 = sst [smem:[#allocation33_spill]] %s2627_s4 }
   0x4   :  { %2657 = sst [smem:[#allocation34_spill]] %s2628_s5 }
   0x5   :  { %11 = vsyncpa [#allocation5], 0 }
   0x6   :  { %13 = vsyncpa [#allocation5 + $0x1], 0 }
   0x7   :  { %14 = vsyncpa [#allocation8], 0 }
   0x8   :  { %16 = vsyncpa [#allocation8 + $0x1], 0 }
   0x9   :  { %17 = vsyncpa [#allocation6], 0 }
   0xa   :  { %19 = vsyncpa [#allocation6 + $0x1], 0 }
   0xb   :  { %20 = vsyncpa [#allocation12], 0 }
   0xc   :  { %22 = vsyncpa [#allocation12 + $0x1], 0  ;;  %s1826_s18 = smov 0   ;;  %s1828_s19 = smov 0  }
   0xd   :  { %s1830_s20 = smov 0   ;;  %s1832_s21 = smov 0  }
   0xe   :  { %s1834_s22 = smov 0   ;;  %s1836_s23 = smov 0  }
   0xf   :  { %s1838_s24 = smov 0   ;;  %s1840_s25 = smov 0  }
  0x10   :  { %s1842_s26 = smov 0   ;;  %s1844_s27 = smov 0  }
  0x11   :  { %s1846_s28 = smov 0   ;;  %s1848_s29 = smov 0  }
  0x12   :  { %s1850_s30 = smov 0   ;;  %s1852_s6 = smov 0  }
  0x13   :  { %s1854_s7 = smov 0   ;;  %s1856_s8 = smov 0  }
  0x14 LB: > { %2658 = sst [smem:[#allocation17_spill]] %s1740_s22  ;;  %s1905_s9 = sadd.s32 4294967295, %s1784_s8   ;;  %s1784_s8 = sphi %s1856_s8, %s28_s8   ;;  %s1780_s7 = sphi %s1854_s7, %s2728_s7   ;;  %s1776_s6 = sphi %s1852_s6, %s2727_s6   ;;  %s1772_s30 = sphi %s1850_s30, %s2738_s30   ;;  %s1768_s29 = sphi %s1848_s29, %s2725_s29   ;;  %s1764_s28 = sphi %s1846_s28, %s2737_s28   ;;  %s1760_s27 = sphi %s1844_s27, %s2736_s27   ;;  %s1756_s26 = sphi %s1842_s26, %s2735_s26   ;;  %s1752_s25 = sphi %s1840_s25, %s2734_s25   ;;  %s1748_s24 = sphi %s1838_s24, %s2722_s24   ;;  %s1744_s23 = sphi %s1836_s23, %s2733_s23   ;;  %s1740_s22 = sphi %s1834_s22, %s2732_s22   ;;  %s1736_s21 = sphi %s1832_s21, %s2721_s21   ;;  %s1732_s20 = sphi %s1830_s20, %s2731_s20   ;;  %s1728_s19 = sphi %s1828_s19, %s2730_s19   ;;  %s1724_s18 = sphi %s1826_s18, %s2729_s18  }
  0x15   : > { %2659 = sst [smem:[#allocation18_spill]] %s1752_s25  ;;  %s40_s10 = sadd.s32 1, %s1772_s30 }
  0x16   : > { %2660 = sst [smem:[#allocation19_spill]] %s1760_s27  ;;  %p1908_p0 = scmp.ge.s32.totalorder %s40_s10, 2 }
  0x17   : > { %2661 = sst [smem:[#allocation20_spill]] %s1764_s28  ;;  %p2639_p1 = scmp.eq.s32.totalorder %s1784_s8, 0 }
  0x18   : > { %2662 = sst [smem:[#allocation21_spill]] %s1768_s29  ;;  %p2638_p2 = scmp.eq.s32.totalorder %s1905_s9, 0 }
  0x19   : > { %2663 = sst [smem:[#allocation22_spill]] %s1776_s6  ;;  %s2740_s10 = smov (%p1908_p0, %s40_s10), 0 }
  0x1a   : > { %2664 = sst [smem:[#allocation23_spill]] %s1780_s7  ;;  %p89_p3 = scmp.ne.s32.totalorder %s1744_s23, %s1740_s22 }
  0x1b   : > { %2666 = sst [smem:[#allocation24_spill]] %s2740_s10  ;;  %p95_p4 = scmp.ne.s32.totalorder %s1740_s22, %s1736_s21 }
  0x1c   : > { %p1927_p5 = por %p89_p3, %p2639_p1  ;;  %p2637_p8 = scmp.lt.s32.totalorder %s1784_s8, 8 }
  0x1d   : > { %p1934_p7 = por %p95_p4, %p2638_p2  ;;  %s249_s17 = sand.u32 1, %s1784_s8  }
  0x1e   : > { %s2634_s13 = sand.u32 1, %s1744_s23   ;;  %s1120_s21 = sshll.u32 %s1780_s7, 1 }
  0x1f   : > { %s2668_s16 = scalar_select %p1934_p7, 1, 0 }
  0x20   : > { %s1119_s14 = sshll.u32 %s2634_s13, 2  ;;  %s1945_s12 = sadd.s32 %s1772_s30, %s1120_s21 }
  0x21   : > { %2669 = sst [smem:[#allocation25_spill]] %s2668_s16  ;;  %s1121_s5 = sshll.u32 %s1945_s12, 6 }
  0x22   : > { %s253_s4 = scalar_lea.vmem [#allocation7], %s1119_s14  ;;  %s2670_s1 = sld [smem:[#allocation31_spill]] }
  0x23   : > { %s262_s27 = sshll.u32 %s253_s4, 4  ;;  %p1959_p9 = pnand %p2637_p8, %p1927_p5  ;;  %s1953_s27 = int_to_ptr.vmem [resolvable:$true] %s262_s27 }
  0x24   : > { %s1966_s3 = scalar_lea.sflag [#allocation8], %s249_s17 }
  0x25   : > { %p2651_p13 = pneg %p1959_p9 }
  0x28   : > { %s1951_s29 = scalar_lea.hbm %s2670_s1, %s1121_s5  ;;  %s1501_s15 = scalar_lea.hbm %s2670_s1, 256 }
  0x29   : > { %s1496_s5 = scalar_lea.hbm %s1951_s29, 64  ;;  %p1502_p5 = scmp.lt.u32.totalorder %s1951_s29, %s2670_s1 }
  0x2a   : > { %p1497_p12 = scmp.ne.s32.totalorder %s1951_s29, %s1496_s5  ;;  %p1503_p8 = scmp.lt.u32.totalorder %s1501_s15, %s1496_s5 }
  0x2b   : > { %p1505_p2 = scmp.lt.u32.totalorder %s1496_s5, %s1951_s29 }
  0x2c   : > { %p1499_p3 = pnand %p2651_p13, %p1497_p12  ;;  %p1504_p6 = por %p1503_p8, %p1502_p5 }
  0x2e   : > { %p1500_p4 = pneg %p1499_p3  ;;  %p1506_p1 = por %p1505_p2, %p1504_p6 }
  0x30   : > { %p1507_p10 = pnand %p1506_p1, %p1500_p4 }
  0x32   : > { %1510 = shalt.err (!%p1507_p10)
}
  0x33   : > { %s1511_s17 = scalar_lea.vmem %s1953_s27, 64  ;;  %s1786_s28 = smov [#allocation7]  }
  0x34   : > { %p1512_p12 = scmp.ne.s32.totalorder %s1953_s27, %s1511_s17  ;;  %s1516_s14 = sshll.u32 %s1786_s28, 4  ;;  %s1517_s14 = int_to_ptr.vmem [resolvable:$false] %s1516_s14 }
  0x35   : > { %s1518_s13 = scalar_lea.vmem %s1517_s14, 128  ;;  %p1519_p7 = scmp.lt.s32.totalorder %s1953_s27, %s1517_s14 }
  0x36   : > { %p1514_p3 = pnand %p1512_p12, %p2651_p13  ;;  %p1520_p8 = scmp.lt.s32.totalorder %s1518_s13, %s1511_s17 }
  0x38   : > { %p1515_p11 = pneg %p1514_p3  ;;  %p1521_p5 = por %p1520_p8, %p1519_p7 }
  0x3a   : > { %p1522_p2 = pnand %p1521_p5, %p1515_p11 }
  0x3c   : > { %1525 = shalt.err (!%p1522_p2)
}
  0x3d   : > { %1350 = dma.hbm_to_vmem [thread:$0]  (!%p1959_p9), %s1951_s29, 64, %s1953_s27, %s1966_s3  }
  0x3e   : > { %p2672_p1 = scmp.lt.s32.totalorder %s1784_s8, 9  ;;  %p2673_p6 = scmp.ge.s32.totalorder %s1784_s8, 1 }
  0x3f   : > { %s1114_s5 = sadd.s32 4294967294, %s1784_s8   ;;  %s43_s15 = sadd.s32 1, %s1776_s6 }
  0x40   : > { %p1998_p7 = pnand %p2673_p6, %p2672_p1  ;;  %s2742_s15 = smov (!%p1908_p0, %s43_s15), %s1776_s6 }
  0x41   : > { %s54_s17 = sadd.s32 1, %s1756_s26  ;;  %p61_p10 = scmp.ne.s32.totalorder %s1756_s26, %s1752_s25 }
  0x42   : > { %s2674_s16 = scalar_select %p1998_p7, 1, 0 }
  0x43   : > { %p45_p11 = scmp.ge.s32.totalorder %s2742_s15, 2  ;;  %p67_p4 = scmp.ne.s32.totalorder %s1752_s25, %s1748_s24 }
  0x44   : > { %2675 = sst [smem:[#allocation26_spill]] %s2674_s16  ;;  %p2676_p12 = scmp.eq.s32.totalorder %s1784_s8, 0 }
  0x45   : > { %s166_s29 = sadd.s32 1, %s1732_s20  ;;  %s2744_s15 = smov (%p45_p11, %s2742_s15), 0 }
  0x46   : > { %p2014_p3 = por %p2676_p12, %p61_p10  ;;  %2678 = sst [smem:[#allocation27_spill]] %s2744_s15 }
  0x47   : > { %s2679_s28 = sadd.s32 1, %s1780_s7  ;;  %s51_s11 = ssub.s32 %s1776_s6, %s2744_s15 }
  0x48   : > { %s2746_s28 = smov (!%p45_p11, %s2679_s28), %s1780_s7  ;;  %p2680_p0 = scmp.eq.s32.totalorder %s1905_s9, 0 }
  0x49   : > { %p49_p5 = scmp.ge.s32.totalorder %s2746_s28, 2  ;;  %p52_p2 = scmp.eq.s32.totalorder %s51_s11, 0 }
  0x4a   : > { %p2028_p8 = por %p2680_p0, %p67_p4  ;;  %p176_p1 = scmp.ne.s32.totalorder %s1732_s20, %s1728_s19 }
  0x4b   : > { %p182_p6 = scmp.ne.s32.totalorder %s1728_s19, %s1724_s18  ;;  %s2748_s28 = smov (%p49_p5, %s2746_s28), 0 }
  0x4c   : > { %s2681_s14 = scalar_select %p2028_p8, 1, 0 }
  0x4d   : > { %2683 = sst [smem:[#allocation29_spill]] %s2748_s28  ;;  %s77_s13 = ssub.s32 %s1780_s7, %s2748_s28 }
  0x4e   : > { %2682 = sst [smem:[#allocation28_spill]] %s2681_s14  ;;  %p2685_p10 = scmp.eq.s32.totalorder %s1905_s9, 7 }
  0x4f   : > { %s2039_s24 = scalar_select %p52_p2, %s1756_s26, %s54_s17  }
  0x50   : > { %p2045_p11 = por %p2685_p10, %p176_p1  ;;  %s2687_s1 = ssub.s32 %s1772_s30, %s2740_s10 }
  0x51   : > { %2684 = sst [smem:[#allocation30_spill]] %s2039_s24  ;;  %s79_s15 = sor.u32 %s2687_s1, %s77_s13 }
  0x52   : > { %s2686_s4 = scalar_select %p2045_p11, 1, 0 }
  0x53   : > { %s163_s22 = sor.u32 %s77_s13, %s51_s11  ;;  %p80_p4 = scmp.eq.s32.totalorder %s79_s15, 0 }
  0x54   : > { %p164_p12 = scmp.eq.s32.totalorder %s163_s22, 0  ;;  %p183_p0 = scmp.eq.s32.totalorder %s1114_s5, 7 }
  0x55   : > { %s231_s14 = sand.u32 1, %s1756_s26   ;;  %s2688_s25 = sadd.s32 1, %s1744_s23 }
  0x56   : > { %s2056_s16 = scalar_select %p80_p4, %s1744_s23, %s2688_s25  }
  0x57   : > { %s2059_s17 = scalar_select %p164_p12, %s1732_s20, %s166_s29  }
  0x58   : > { %p2064_p5 = por %p183_p0, %p182_p6  ;;  %s1117_s7 = sshll.u32 %s231_s14, 1 }
  0x59   : > { %s1118_s24 = sshll.u32 %s1776_s6, 5  ;;  %s235_s22 = scalar_lea.vmem [#allocation4], %s1117_s7 }
  0x5a   : > { %s2689_s28 = scalar_select %p2064_p5, 1, 0 }
  0x5b   : > { %s2072_s11 = scalar_lea.hbm %s2623_s0, %s1118_s24  ;;  %s242_s25 = sshll.u32 %s235_s22, 4  ;;  %s2082_s25 = int_to_ptr.vmem [resolvable:$true] %s242_s25 }
  0x5c   : > { %p2690_p2 = scmp.lt.s32.totalorder %s1784_s8, 8  ;;  %s2692_s15 = sshll.u32 %s1945_s12, 4 }
  0x5d   : > { %s2089_s24 = scalar_lea.hbm %s2625_s2, %s2692_s15  ;;  %s232_s13 = scalar_lea.sflag [#allocation5], %s231_s14 }
  0x5e   : > { %p2078_p1 = pnand %p2690_p2, %p2014_p3  ;;  %s1526_s1 = scalar_lea.hbm %s2072_s11, 32 }
  0x5f   : > { %p1527_p6 = scmp.ne.s32.totalorder %s2072_s11, %s1526_s1  ;;  %s1531_s22 = scalar_lea.hbm %s2623_s0, 64 }
  0x60   : > { %p1528_p10 = pneg %p2078_p1  ;;  %p1532_p12 = scmp.lt.u32.totalorder %s2072_s11, %s2623_s0 }
  0x61   : > { %p1533_p0 = scmp.lt.u32.totalorder %s1531_s22, %s1526_s1  ;;  %p1535_p13 = scmp.lt.u32.totalorder %s1526_s1, %s2072_s11 }
  0x62   : > { %p1529_p3 = pnand %p1528_p10, %p1527_p6 }
  0x63   : > { %p1534_p2 = por %p1533_p0, %p1532_p12 }
  0x64   : > { %p1530_p4 = pneg %p1529_p3 }
  0x65   : > { %p1536_p5 = por %p1535_p13, %p1534_p2 }
  0x67   : > { %p1537_p11 = pnand %p1536_p5, %p1530_p4 }
  0x69   : > { %1540 = shalt.err (!%p1537_p11)
}
  0x6a   : > { %s1541_s14 = scalar_lea.vmem %s2082_s25, 32  ;;  %s1787_s15 = smov [#allocation4]  }
  0x6b   : > { %p1542_p6 = scmp.ne.s32.totalorder %s2082_s25, %s1541_s14  ;;  %s1546_s10 = sshll.u32 %s1787_s15, 4  ;;  %s1547_s10 = int_to_ptr.vmem [resolvable:$false] %s1546_s10 }
  0x6c   : > { %s1548_s6 = scalar_lea.vmem %s1547_s10, 64  ;;  %p1549_p7 = scmp.lt.s32.totalorder %s2082_s25, %s1547_s10 }
  0x6d   : > { %p1544_p3 = pnand %p1542_p6, %p1528_p10  ;;  %p1550_p12 = scmp.lt.s32.totalorder %s1548_s6, %s1541_s14 }
  0x6f   : > { %p1545_p8 = pneg %p1544_p3  ;;  %p1551_p0 = por %p1550_p12, %p1549_p7 }
  0x71   : > { %p1552_p13 = pnand %p1551_p0, %p1545_p8 }
  0x73   : > { %1555 = shalt.err (!%p1552_p13)
}
  0x74   : > { %1347 = dma.hbm_to_vmem [thread:$0]  (!%p2078_p1), %s2072_s11, 32, %s2082_s25, %s232_s13  }
  0x75   : > { %s2693_s29 = sand.u32 1, %s1744_s23   ;;  %s1556_s27 = scalar_lea.hbm %s2089_s24, 16 }
  0x76   : > { %s272_s1 = scalar_lea.vmem [#allocation9], %s2693_s29  ;;  %p1557_p11 = scmp.ne.s32.totalorder %s2089_s24, %s1556_s27 }
  0x77   : > { %s281_s7 = sshll.u32 %s272_s1, 4  ;;  %p2694_p7 = pneg %p1959_p9  ;;  %s282_s7 = int_to_ptr.vmem [resolvable:$true] %s281_s7 }
  0x78   : > { %s1561_s12 = scalar_lea.hbm %s2625_s2, 64  ;;  %p1562_p10 = scmp.lt.u32.totalorder %s2089_s24, %s2625_s2 }
  0x79   : > { %p1559_p8 = pnand %p1557_p11, %p2694_p7  ;;  %p1563_p4 = scmp.lt.u32.totalorder %s1561_s12, %s1556_s27 }
  0x7a   : > { %p1565_p2 = scmp.lt.u32.totalorder %s1556_s27, %s2089_s24 }
  0x7b   : > { %p1560_p5 = pneg %p1559_p8  ;;  %p1564_p1 = por %p1563_p4, %p1562_p10 }
  0x7d   : > { %p1566_p6 = por %p1565_p2, %p1564_p1 }
  0x7f   : > { %p1567_p3 = pnand %p1566_p6, %p1560_p5 }
  0x81   : > { %1570 = shalt.err (!%p1567_p3)
}
  0x82   : > { %s1571_s11 = scalar_lea.vmem %s282_s7, 16  ;;  %p2695_p0 = pmov %p2694_p7 }
  0x83   : > { %p1572_p12 = scmp.ne.s32.totalorder %s282_s7, %s1571_s11  ;;  %s1788_s25 = smov [#allocation9]  }
  0x84   : > { %s1576_s13 = sshll.u32 %s1788_s25, 4  ;;  %s1577_s13 = int_to_ptr.vmem [resolvable:$false] %s1576_s13 }
  0x85   : > { %p1574_p13 = pnand %p1572_p12, %p2695_p0  ;;  %s1578_s10 = scalar_lea.vmem %s1577_s13, 32 }
  0x86   : > { %p1579_p7 = scmp.lt.s32.totalorder %s282_s7, %s1577_s13  ;;  %p1580_p8 = scmp.lt.s32.totalorder %s1578_s10, %s1571_s11 }
  0x87   : > { %p1575_p11 = pneg %p1574_p13 }
  0x88   : > { %p1581_p4 = por %p1580_p8, %p1579_p7 }
  0x8a   : > { %p1582_p10 = pnand %p1581_p4, %p1575_p11 }
  0x8c   : > { %1585 = shalt.err (!%p1582_p10)
}
  0x8d   : > { %1353 = dma.hbm_to_vmem [thread:$0]  (!%p1959_p9), %s2089_s24, 16, %s282_s7, %s1966_s3  }
  0x8e   : > { %s2696_s6 = sld [smem:[#allocation26_spill]] }
  0x94   : > { %p2697_p5 = scmp.ne.s32.totalorder %s2696_s6, 0 }
  0x95   : > { %s2698_s29 = sld [smem:[#allocation18_spill]] (!%p2697_p5)  ;;  %s2699_s1 = sld [smem:[#allocation28_spill]] (!%p2697_p5) }
  0x96   : > { %301 = sbr.rel (%p2697_p5) target bundleno = 547 (0x223), region = 36 }
  0x9b   : > { %s303_s27 = sand.u32 (!%p2697_p5), 1, %s2698_s29   ;;  %p2700_p1 = scmp.ne.s32.totalorder (!%p2697_p5), %s2699_s1, 0 }
  0x9c   : > { %s2141_s5 = sshll.u32 (!%p2697_p5), %s303_s27, 1  ;;  %s304_s22 = scalar_lea.sflag (!%p2697_p5), [#allocation5], %s303_s27 }
  0x9d   : > { %s307_s12 = scalar_lea.vmem [#allocation4], %s2141_s5 }
  0x9e   : > { %1707 = dma.done.wait (%p2700_p1), %s304_s22, 32  }
  0x9f   : > { %1709 = vsyncadd (%p2700_p1), %s304_s22, 4294967264  ;;  %s2701_s21 = sld [smem:[#allocation17_spill]]  ;;  %s2702_s14 = sld [smem:[#allocation25_spill]] }
  0xa0   : > { %s312_s3 = sand.u32 1, %s1905_s9  }
  0xa1   : > { %s313_s15 = scalar_lea.sflag [#allocation8], %s312_s3 }
  0xa5   : > { %s314_s24 = sand.u32 1, %s2701_s21   ;;  %p2703_p9 = scmp.ne.s32.totalorder %s2702_s14, 0 }
  0xa6   : > { %s2150_s7 = sshll.u32 %s314_s24, 2 }
  0xa7   : > { %1711 = dma.done.wait (%p2703_p9), %s313_s15, 80  }
  0xa8   : > { %1713 = vsyncadd (%p2703_p9), %s313_s15, 4294967216  ;;  %s2704_s25 = sld [smem:[#allocation21_spill]]  ;;  %s2705_s13 = sld [smem:[#allocation20_spill]] }
  0xa9   : > { %s2158_s10 = sand.u32 1, %s1728_s19   ;;  %s2706_s22 = sld [smem:[#allocation32_spill]] }
  0xaa   : > { %s1127_s9 = sshll.u32 %s2158_s10, 2  ;;  %s2168_s14 = scalar_lea.vmem [#allocation9], %s314_s24 }
  0xab   : > { %s2170_s3 = scalar_lea.vmem [#allocation10], %s1127_s9  ;;  %s371_s15 = scalar_lea.vmem [#allocation11], %s2158_s10 }
  0xac   : > { %s2707_s11 = sld [smem:[#allocation19_spill]] }
  0xae   : > { %p372_p2 = scmp.lt.s32.totalorder %s2704_s25, 1  ;;  %p374_p6 = scmp.lt.s32.totalorder %s2705_s13, 1 }
  0xb0   : > { %s2750_s25 = smov (!%p372_p2, %s2704_s25), 1  ;;  %s2752_s13 = smov (!%p374_p6, %s2705_s13), 1 }
  0xb1   : > { %s1128_s6 = sshll.u32 %s2750_s25, 1 }
  0xb2   : > { %s377_s29 = sadd.s32 %s1128_s6, %s2752_s13  ;;  %p1130_p3 = scmp.ne.s32.totalorder %s2707_s11, 0 }
  0xb3   : > { %s1129_s1 = sshll.u32 %s377_s29, 1  ;;  %v1789_v0 = vmov (!%p1130_p3), 0.0  }
  0xb4   : > { %s379_s21 = scalar_lea.vmem %s2706_s22, %s1129_s1  ;;  %383 = sbr.rel (%p1130_p3) target bundleno = 187 (0xbb), region = 52  ;;  %384 = vst [vmem:[#allocation2] sm:$0xf] (!%p1130_p3), %v1789_v0  ;;  %385 = vst [vmem:[#allocation3] sm:$0x1] (!%p1130_p3), %v1789_v0 }
  0xbb PF: > { %v386_v1 = vld [vmem:[%s307_s12] sm:$0x1]  ;;  %s2708_s25 = sld [smem:[#allocation19_spill]]  ;;  %v387_v2 = vld [vmem:[%s307_s12 + $0x1] sm:$0x1]  ;;  %v400_v3 = vlaneseq  ;;  %v1790_v4 = vmov 0.0|0.0  }
  0xbc   : > { %1300 = vmatprep.subr.bf16.mxu1 %v1790_v4  ;;  %1276 = vmatprep.subr.bf16.mxu0 %v1790_v4  ;;  %v388_v5 = vld [vmem:[%s379_s21] sm:$0x1]  ;;  %v389_v6 = vld [vmem:[%s379_s21 + $0x1] sm:$0x1]  ;;  %vm1791_vm0 = vmmov 0   ;;  %v1792_v15 = vmov 0.0  }
  0xbd   : > { %v390_v8 = vadd.f32 %v388_v5, %v386_v1  ;;  %v391_v9 = vadd.f32 %v389_v6, %v387_v2  ;;  %v2179_v10 = vshrl.u32 %v400_v3, 7  ;;  %1273 = vmatprep.mubr.msk.f32.mxu1 %vm1791_vm0, %v1792_v15  ;;  %1238 = vmatprep.mubr.msk.f32.mxu0 %vm1791_vm0, %v1792_v15  ;;  %v1793_v49 = vmov 1.0|1.0   ;;  %s2713_s12 = scalar_lea.vmem [#allocation7], %s2150_s7 }
  0xbf   : > { %v402_v11 = vadd.s32 8, %v2179_v10  ;;  %v2187_v13 = vsub.s32 0, %v2179_v10  ;;  %v1330_v14 = vcvt.f32.s32 %v391_v9  ;;  %v1333_v16 = vcvt.f32.s32 %v390_v8 }
  0xc0   : > { %v392_v17 = vfloor.f32 %v391_v9  ;;  %v393_v18 = vfloor.f32 %v390_v8  ;;  %v403_v19 = vadd.s32 16, %v2179_v10  ;;  %v404_v21 = vadd.s32 24, %v2179_v10 }
  0xc1   : > { %s1131_s13 = sshll.u32 %s2708_s25, 7  ;;  %vm753_vm1 = vcmp.ge.s32.totalorder %v1330_v14, 0  ;;  %vm754_vm2 = vcmp.lt.s32.totalorder %v1330_v14, 16  ;;  %vm756_vm4 = vcmp.ge.s32.totalorder %v1333_v16, 0  ;;  %vm758_vm5 = vcmp.lt.s32.totalorder %v1333_v16, 16  ;;  %p1164_p12 = scmp.ne.s32.totalorder %s2708_s25, 1 }
  0xc2   : > { %v2177_v7 = vstv %s1131_s13  ;;  %vm755_vm3 = vmand %vm753_vm1, %vm754_vm2  ;;  %v760_v22 = vmul.u32 16, %v1333_v16  ;;  %v394_v23 = vsub.f32 %v391_v9, %v392_v17  ;;  %v395_v24 = vsub.f32 %v390_v8, %v393_v18 }
  0xc3   : > { %v2184_v12 = vadd.s32 %v2177_v7, %v2179_v10  ;;  %v2191_v20 = vadd.s32 %v2177_v7, %v402_v11  ;;  %vm757_vm6 = vmand %vm755_vm3, %vm756_vm4  ;;  %v1324_v25 = vtrunc.f32 %v392_v17  ;;  %v1326_v26 = vtrunc.f32 %v393_v18 }
  0xc4   : > { %v2195_v27 = vadd.s32 %v2177_v7, %v403_v19  ;;  %vm759_vm7 = vmand %vm757_vm6, %vm758_vm5  ;;  %v761_v28 = vadd.s32 %v1330_v14, %v760_v22  ;;  %v435_v29 = vsub.f32 1.0, %v394_v23  ;;  %v2198_v30 = vadd.s32 %v2177_v7, %v404_v21 }
  0xc5   : > { %v405_v31 = vadd.s32 32, %v2179_v10  ;;  %v1325_v32 = vcvt.f32.s32 %v1324_v25  ;;  %v1327_v33 = vcvt.f32.s32 %v1326_v26  ;;  %v436_v34 = vsub.f32 1.0, %v395_v24 }
  0xc6   : > { %v440_v35 = vmul.f32 %v395_v24, %v394_v23  ;;  %v762_v36 = vsel %vm759_vm7, %v761_v28, 4294967295  ;;  %v439_v37 = vmul.f32 %v435_v29, %v395_v24  ;;  %v406_v38 = vadd.s32 40, %v2179_v10 }
  0xc7   : > { %v2203_v39 = vadd.s32 %v2177_v7, %v405_v31  ;;  %v2206_v40 = vrot.slane %v762_v36, %v2187_v13  ;;  %v398_v41 = vadd.s32 1, %v1325_v32  ;;  %v399_v42 = vadd.s32 1, %v1327_v33 }
  0xc8   : > { %v437_v43 = vmul.f32 %v436_v34, %v435_v29  ;;  %v438_v44 = vmul.f32 %v436_v34, %v394_v23  ;;  %vm441_vm8 = vcmp.ge.s32.totalorder %v1325_v32, 0  ;;  %vm442_vm9 = vcmp.lt.s32.totalorder %v1325_v32, 16 }
  0xc9   : > { %vm444_vm10 = vcmp.ge.s32.totalorder %v1327_v33, 0  ;;  %vm767_vm11 = vcmp.eq.s32.totalorder %v2184_v12, %v2206_v40  ;;  %vm768_vm12 = vcmp.eq.s32.totalorder %v2191_v20, %v2206_v40  ;;  %vm2212_vm13 = vmand %vm441_vm8, %vm442_vm9  ;;  %vm446_vm14 = vcmp.lt.s32.totalorder %v1327_v33, 16 }
  0xca   : > { %v448_v46 = vmul.u32 16, %v1327_v33  ;;  %vm1301_vm15 = vmpackc.low %vm768_vm12, %vm767_vm11  ;;  %v2217_v47 = vrot.slane %v437_v43, %v2187_v13  ;;  %vm491_vm0 = vcmp.ge.s32.totalorder %v398_v41, 0  ;;  %vm492_vm1 = vcmp.lt.s32.totalorder %v398_v41, 16 }
  0xcb   : > { %v2220_v48 = vrot.slane %v438_v44, %v2187_v13  ;;  %1302 = vmatpush3.bf16.msk.msra.mxu1 %vm1301_vm15, %v1793_v49  ;;  %vm445_vm2 = vmand %vm2212_vm13, %vm444_vm10  ;;  %vm554_vm3 = vcmp.ge.s32.totalorder %v399_v42, 0  ;;  %vm556_vm4 = vcmp.lt.s32.totalorder %v399_v42, 16  ;;  %v558_v52 = vmul.u32 16, %v399_v42 }
  0xcc   : > { %v449_v50 = vadd.s32 %v1325_v32, %v448_v46  ;;  %v496_v51 = vadd.s32 %v448_v46, %v398_v41  ;;  %vm447_vm5 = vmand %vm445_vm2, %vm446_vm14  ;;  %v2228_v53 = vrot.slane %v439_v37, %v2187_v13  ;;  %v2231_v54 = vrot.slane %v440_v35, %v2187_v13  ;;  %1303 = vmatprep.subr.bf16.mxu1 %v1790_v4 }
  0xcd   : > { %vm769_vm6 = vcmp.eq.s32.totalorder %v2195_v27, %v2206_v40  ;;  %vm2238_vm7 = vmand %vm491_vm0, %vm492_vm1  ;;  %vm770_vm8 = vcmp.eq.s32.totalorder %v2198_v30, %v2206_v40  ;;  %v2245_v57 = vadd.s32 %v2177_v7, %v406_v38  ;;  %vm771_vm9 = vcmp.eq.s32.totalorder %v2203_v39, %v2206_v40 }
  0xce   : > { %v450_v55 = vsel %vm447_vm5, %v449_v50, 4294967295  ;;  %vm494_vm11 = vmand %vm2238_vm7, %vm444_vm10  ;;  %v559_v59 = vadd.s32 %v1325_v32, %v558_v52  ;;  %v619_v60 = vadd.s32 %v558_v52, %v398_v41  ;;  %v2256_v61 = vadd.s32 48, %v2179_v10 }
  0xcf   : > { %v2250_v58 = vrot.slane %v450_v55, %v2187_v13  ;;  %vm495_vm12 = vmand %vm494_vm11, %vm446_vm14  ;;  %vm772_vm15 = vcmp.eq.s32.totalorder %v2245_v57, %v2206_v40  ;;  %v2262_v62 = vadd.s32 56, %v2179_v10  ;;  %v2265_v63 = vadd.s32 64, %v2179_v10 }
  0xd0   : > { %v2268_v0 = vadd.s32 72, %v2179_v10  ;;  %v497_v1 = vsel %vm495_vm12, %v496_v51, 4294967295  ;;  %vm555_vm14 = vmand %vm2212_vm13, %vm554_vm3 }
  0xd1   : > { %vm455_vm10 = vcmp.eq.s32.totalorder %v2184_v12, %v2250_v58  ;;  %vm456_vm0 = vcmp.eq.s32.totalorder %v2191_v20, %v2250_v58  ;;  %vm457_vm1 = vcmp.eq.s32.totalorder %v2195_v27, %v2250_v58  ;;  %v2282_v5 = vrot.slane %v497_v1, %v2187_v13  ;;  %vm557_vm2 = vmand %vm555_vm14, %vm556_vm4 }
  0xd2   : > { %v475_v2 = vsel %vm455_vm10, %v2217_v47, 0.0  ;;  %v476_v3 = vsel %vm456_vm0, %v2217_v47, 0.0  ;;  %vm458_vm5 = vcmp.eq.s32.totalorder %v2198_v30, %v2250_v58  ;;  %v560_v6 = vsel %vm557_vm2, %v559_v59, 4294967295  ;;  %vm617_vm13 = vmand %vm2238_vm7, %vm554_vm3 }
  0xd3   : > { %v477_v8 = vsel %vm457_vm1, %v2217_v47, 0.0  ;;  %v478_v9 = vsel %vm458_vm5, %v2217_v47, 0.0  ;;  %vm459_vm11 = vcmp.eq.s32.totalorder %v2203_v39, %v2250_v58  ;;  %vm502_vm12 = vcmp.eq.s32.totalorder %v2184_v12, %v2282_v5  ;;  %vm618_vm0 = vmand %vm617_vm13, %vm556_vm4 }
  0xd4   : > { %vm503_vm10 = vcmp.eq.s32.totalorder %v2191_v20, %v2282_v5  ;;  %v2299_v11 = vrot.slane %v560_v6, %v2187_v13  ;;  %vm504_vm3 = vcmp.eq.s32.totalorder %v2195_v27, %v2282_v5  ;;  %v522_v14 = vsel %vm502_vm12, %v2220_v48, 0.0  ;;  %vm1304_vm7 = vmpackc.low %vm770_vm8, %vm769_vm6 }
  0xd5   : > { %v523_v15 = vsel %vm503_vm10, %v2220_v48, 0.0  ;;  %v620_v16 = vsel %vm618_vm0, %v619_v60, 4294967295  ;;  %vm505_vm14 = vcmp.eq.s32.totalorder %v2198_v30, %v2282_v5  ;;  %v538_v17 = vadd.f32 %v522_v14, %v475_v2  ;;  %1305 = vmatpush3.bf16.msk.msra.mxu1 %vm1304_vm7, %v1793_v49  ;;  %vm1307_vm6 = vmpackc.low %vm772_vm15, %vm771_vm9 }
  0xd6   : > { %v539_v18 = vadd.f32 %v523_v15, %v476_v3  ;;  %vm565_vm4 = vcmp.eq.s32.totalorder %v2184_v12, %v2299_v11  ;;  %vm566_vm1 = vcmp.eq.s32.totalorder %v2191_v20, %v2299_v11  ;;  %v2322_v22 = vrot.slane %v620_v16, %v2187_v13  ;;  %1306 = vmatprep.subr.bf16.mxu1 %v1790_v4 }
  0xd7   : > { %v585_v19 = vsel %vm565_vm4, %v2228_v53, 0.0  ;;  %v586_v21 = vsel %vm566_vm1, %v2228_v53, 0.0  ;;  %v524_v23 = vsel %vm504_vm3, %v2220_v48, 0.0  ;;  %v525_v26 = vsel %vm505_vm14, %v2220_v48, 0.0 }
  0xd8   : > { %v601_v24 = vadd.f32 %v585_v19, %v538_v17  ;;  %v602_v25 = vadd.f32 %v586_v21, %v539_v18  ;;  %v540_v28 = vadd.f32 %v524_v23, %v477_v8  ;;  %vm625_vm8 = vcmp.eq.s32.totalorder %v2184_v12, %v2322_v22 }
  0xd9   : > { %vm626_vm2 = vcmp.eq.s32.totalorder %v2191_v20, %v2322_v22  ;;  %v541_v13 = vadd.f32 %v525_v26, %v478_v9  ;;  %vm567_vm5 = vcmp.eq.s32.totalorder %v2195_v27, %v2299_v11  ;;  %v645_v29 = vsel %vm625_vm8, %v2231_v54, 0.0  ;;  %1308 = vmatpush3.bf16.msk.msra.mxu1 %vm1307_vm6, %v1793_v49 }
  0xda   : > { %v646_v31 = vsel %vm626_vm2, %v2231_v54, 0.0  ;;  %vm568_vm9 = vcmp.eq.s32.totalorder %v2198_v30, %v2299_v11  ;;  %v587_v32 = vsel %vm567_vm5, %v2228_v53, 0.0  ;;  %v661_v33 = vadd.f32 %v645_v29, %v601_v24  ;;  %1309 = vmatprep.subr.bf16.mxu1 %v1790_v4 }
  0xdb   : > { %v662_v12 = vadd.f32 %v646_v31, %v602_v25  ;;  %v588_v34 = vsel %vm568_vm9, %v2228_v53, 0.0  ;;  %v603_v20 = vadd.f32 %v587_v32, %v540_v28  ;;  %vm627_vm15 = vcmp.eq.s32.totalorder %v2195_v27, %v2322_v22 }
  0xdc   : > { %v604_v35 = vadd.f32 %v588_v34, %v541_v13  ;;  %vm628_vm13 = vcmp.eq.s32.totalorder %v2198_v30, %v2322_v22  ;;  %vm460_vm12 = vcmp.eq.s32.totalorder %v2245_v57, %v2250_v58  ;;  %v647_v37 = vsel %vm627_vm15, %v2231_v54, 0.0 }
  0xdd   : > { %v1277_v36 = vpack.c.bf16 %v662_v12, %v661_v33  ;;  %v648_v38 = vsel %vm628_vm13, %v2231_v54, 0.0  ;;  %v479_v41 = vsel %vm459_vm11, %v2217_v47, 0.0  ;;  %v663_v42 = vadd.f32 %v647_v37, %v603_v20 }
  0xde   : > { %v664_v43 = vadd.f32 %v648_v38, %v604_v35  ;;  %v480_v27 = vsel %vm460_vm12, %v2217_v47, 0.0  ;;  %vm506_vm10 = vcmp.eq.s32.totalorder %v2203_v39, %v2282_v5  ;;  %vm507_vm0 = vcmp.eq.s32.totalorder %v2245_v57, %v2282_v5 }
  0xdf   : > { %1278 = vmatpush3.bf16.msra.mxu0 %v1277_v36  ;;  %v526_v30 = vsel %vm506_vm10, %v2220_v48, 0.0  ;;  %vm569_vm3 = vcmp.eq.s32.totalorder %v2203_v39, %v2299_v11  ;;  %vm570_vm7 = vcmp.eq.s32.totalorder %v2245_v57, %v2299_v11  ;;  %v527_v45 = vsel %vm507_vm0, %v2220_v48, 0.0 }
  0xe0   : > { %1279 = vmatprep.subr.bf16.mxu0 %v1790_v4  ;;  %v1280_v44 = vpack.c.bf16 %v664_v43, %v663_v42  ;;  %v542_v46 = vadd.f32 %v526_v30, %v479_v41  ;;  %v589_v50 = vsel %vm569_vm3, %v2228_v53, 0.0  ;;  %v543_v51 = vadd.f32 %v527_v45, %v480_v27 }
  0xe1   : > { %v590_v52 = vsel %vm570_vm7, %v2228_v53, 0.0  ;;  %vm629_vm11 = vcmp.eq.s32.totalorder %v2203_v39, %v2322_v22  ;;  %vm630_vm14 = vcmp.eq.s32.totalorder %v2245_v57, %v2322_v22  ;;  %v425_v60 = vadd.s32 %v2177_v7, %v2256_v61 }
  0xe2   : > { %v605_v55 = vadd.f32 %v589_v50, %v542_v46  ;;  %v649_v56 = vsel %vm629_vm11, %v2231_v54, 0.0  ;;  %v650_v59 = vsel %vm630_vm14, %v2231_v54, 0.0  ;;  %v606_v1 = vadd.f32 %v590_v52, %v543_v51 }
  0xe3   : > { %1281 = vmatpush3.bf16.msra.mxu0 %v1280_v44  ;;  %v426_v2 = vadd.s32 %v2177_v7, %v2262_v62  ;;  %v427_v3 = vadd.s32 %v2177_v7, %v2265_v63  ;;  %v428_v39 = vadd.s32 %v2177_v7, %v2268_v0  ;;  %vm773_vm4 = vcmp.eq.s32.totalorder %v425_v60, %v2206_v40 }
  0xe4   : > { %1282 = vmatprep.subr.bf16.mxu0 %v1790_v4  ;;  %v665_v57 = vadd.f32 %v649_v56, %v605_v55  ;;  %vm461_vm1 = vcmp.eq.s32.totalorder %v425_v60, %v2250_v58  ;;  %vm508_vm6 = vcmp.eq.s32.totalorder %v425_v60, %v2282_v5  ;;  %v666_v61 = vadd.f32 %v650_v59, %v606_v1 }
  0xe5   : > { %vm774_vm8 = vcmp.eq.s32.totalorder %v426_v2, %v2206_v40  ;;  %vm462_vm2 = vcmp.eq.s32.totalorder %v426_v2, %v2250_v58  ;;  %v481_v62 = vsel %vm461_vm1, %v2217_v47, 0.0  ;;  %vm509_vm9 = vcmp.eq.s32.totalorder %v426_v2, %v2282_v5 }
  0xe6   : > { %vm1310_vm5 = vmpackc.low %vm774_vm8, %vm773_vm4  ;;  %v482_v63 = vsel %vm462_vm2, %v2217_v47, 0.0  ;;  %v528_v0 = vsel %vm508_vm6, %v2220_v48, 0.0  ;;  %vm571_vm15 = vcmp.eq.s32.totalorder %v425_v60, %v2299_v11  ;;  %v1283_v6 = vpack.c.bf16 %v666_v61, %v665_v57 }
  0xe7   : > { %1311 = vmatpush3.bf16.msk.msra.mxu1 %vm1310_vm5, %v1793_v49  ;;  %v529_v8 = vsel %vm509_vm9, %v2220_v48, 0.0  ;;  %v544_v9 = vadd.f32 %v528_v0, %v481_v62  ;;  %vm572_vm13 = vcmp.eq.s32.totalorder %v426_v2, %v2299_v11  ;;  %v591_v15 = vsel %vm571_vm15, %v2228_v53, 0.0 }
  0xe8   : > { %v545_v14 = vadd.f32 %v529_v8, %v482_v63  ;;  %v592_v16 = vsel %vm572_vm13, %v2228_v53, 0.0  ;;  %vm631_vm12 = vcmp.eq.s32.totalorder %v425_v60, %v2322_v22  ;;  %1312 = vmatprep.subr.bf16.mxu1 %v1790_v4  ;;  %1284 = vmatpush3.bf16.msra.mxu0 %v1283_v6  ;;  %vm632_vm10 = vcmp.eq.s32.totalorder %v426_v2, %v2322_v22 }
  0xe9   : > { %v607_v17 = vadd.f32 %v591_v15, %v544_v9  ;;  %v651_v18 = vsel %vm631_vm12, %v2231_v54, 0.0  ;;  %vm775_vm0 = vcmp.eq.s32.totalorder %v427_v3, %v2206_v40  ;;  %1285 = vmatprep.subr.bf16.mxu0 %v1790_v4  ;;  %v652_v21 = vsel %vm632_vm10, %v2231_v54, 0.0 }
  0xea   : > { %v608_v19 = vadd.f32 %v592_v16, %v545_v14  ;;  %vm776_vm3 = vcmp.eq.s32.totalorder %v428_v39, %v2206_v40  ;;  %vm463_vm7 = vcmp.eq.s32.totalorder %v427_v3, %v2250_v58  ;;  %vm464_vm14 = vcmp.eq.s32.totalorder %v428_v39, %v2250_v58 }
  0xeb   : > { %v667_v23 = vadd.f32 %v651_v18, %v607_v17  ;;  %vm1313_vm11 = vmpackc.low %vm776_vm3, %vm775_vm0  ;;  %v483_v24 = vsel %vm463_vm7, %v2217_v47, 0.0  ;;  %vm510_vm4 = vcmp.eq.s32.totalorder %v427_v3, %v2282_v5  ;;  %v484_v26 = vsel %vm464_vm14, %v2217_v47, 0.0 }
  0xec   : > { %v668_v25 = vadd.f32 %v652_v21, %v608_v19  ;;  %1314 = vmatpush3.bf16.msk.msra.mxu1 %vm1313_vm11, %v1793_v49  ;;  %vm511_vm1 = vcmp.eq.s32.totalorder %v428_v39, %v2282_v5  ;;  %v530_v28 = vsel %vm510_vm4, %v2220_v48, 0.0  ;;  %vm573_vm6 = vcmp.eq.s32.totalorder %v427_v3, %v2299_v11 }
  0xed   : > { %v531_v13 = vsel %vm511_vm1, %v2220_v48, 0.0  ;;  %v546_v29 = vadd.f32 %v530_v28, %v483_v24  ;;  %vm574_vm8 = vcmp.eq.s32.totalorder %v428_v39, %v2299_v11  ;;  %1315 = vmatprep.subr.bf16.mxu1 %v1790_v4  ;;  %v593_v33 = vsel %vm573_vm6, %v2228_v53, 0.0 }
  0xee   : > { %v1286_v31 = vpack.c.bf16 %v668_v25, %v667_v23  ;;  %v547_v32 = vadd.f32 %v531_v13, %v484_v26  ;;  %v594_v12 = vsel %vm574_vm8, %v2228_v53, 0.0  ;;  %vm633_vm2 = vcmp.eq.s32.totalorder %v427_v3, %v2322_v22 }
  0xef   : > { %v609_v34 = vadd.f32 %v593_v33, %v546_v29  ;;  %vm634_vm5 = vcmp.eq.s32.totalorder %v428_v39, %v2322_v22  ;;  %v411_v20 = vadd.s32 80, %v2179_v10  ;;  %v653_v36 = vsel %vm633_vm2, %v2231_v54, 0.0 }
  0xf0   : > { %1287 = vmatpush3.bf16.msra.mxu0 %v1286_v31  ;;  %v610_v35 = vadd.f32 %v594_v12, %v547_v32  ;;  %v654_v37 = vsel %vm634_vm5, %v2231_v54, 0.0  ;;  %v412_v38 = vadd.s32 88, %v2179_v10  ;;  %v413_v43 = vadd.s32 96, %v2179_v10 }
  0xf1   : > { %1288 = vmatprep.subr.bf16.mxu0 %v1790_v4  ;;  %v669_v41 = vadd.f32 %v653_v36, %v609_v34  ;;  %v429_v42 = vadd.s32 %v2177_v7, %v411_v20  ;;  %v414_v27 = vadd.s32 104, %v2179_v10  ;;  %v415_v45 = vadd.s32 112, %v2179_v10 }
  0xf2   : > { %v670_v30 = vadd.f32 %v654_v37, %v610_v35  ;;  %v430_v44 = vadd.s32 %v2177_v7, %v412_v38  ;;  %v416_v46 = vadd.s32 120, %v2179_v10  ;;  %v431_v57 = vadd.s32 %v2177_v7, %v413_v43  ;;  %v815_v38 = vld [vmem:[#allocation3] sm:$0x1]  ;;  %v677_v43 = vld [vmem:[#allocation2] sm:$0xf] }
  0xf3   : > { %vm777_vm9 = vcmp.eq.s32.totalorder %v429_v42, %v2206_v40  ;;  %vm465_vm15 = vcmp.eq.s32.totalorder %v429_v42, %v2250_v58  ;;  %vm512_vm13 = vcmp.eq.s32.totalorder %v429_v42, %v2282_v5  ;;  %vm575_vm12 = vcmp.eq.s32.totalorder %v429_v42, %v2299_v11 }
  0xf4   : > { %v1289_v50 = vpack.c.bf16 %v670_v30, %v669_v41  ;;  %vm778_vm10 = vcmp.eq.s32.totalorder %v430_v44, %v2206_v40  ;;  %vm466_vm0 = vcmp.eq.s32.totalorder %v430_v44, %v2250_v58  ;;  %v485_v51 = vsel %vm465_vm15, %v2217_v47, 0.0 }
  0xf5   : > { %vm1316_vm3 = vmpackc.low %vm778_vm10, %vm777_vm9  ;;  %v486_v52 = vsel %vm466_vm0, %v2217_v47, 0.0  ;;  %vm513_vm7 = vcmp.eq.s32.totalorder %v430_v44, %v2282_v5  ;;  %v532_v10 = vsel %vm512_vm13, %v2220_v48, 0.0  ;;  %vm576_vm11 = vcmp.eq.s32.totalorder %v430_v44, %v2299_v11 }
  0xf6   : > { %1290 = vmatpush3.bf16.msra.mxu0 %v1289_v50  ;;  %1317 = vmatpush3.bf16.msk.msra.mxu1 %vm1316_vm3, %v1793_v49  ;;  %v533_v55 = vsel %vm513_vm7, %v2220_v48, 0.0  ;;  %v548_v56 = vadd.f32 %v532_v10, %v485_v51  ;;  %v595_v59 = vsel %vm575_vm12, %v2228_v53, 0.0  ;;  %v596_v60 = vsel %vm576_vm11, %v2228_v53, 0.0 }
  0xf7   : > { %1291 = vmatprep.subr.bf16.mxu0 %v1790_v4  ;;  %v549_v1 = vadd.f32 %v533_v55, %v486_v52  ;;  %vm635_vm14 = vcmp.eq.s32.totalorder %v429_v42, %v2322_v22  ;;  %vm636_vm4 = vcmp.eq.s32.totalorder %v430_v44, %v2322_v22  ;;  %1318 = vmatprep.subr.bf16.mxu1 %v1790_v4 }
  0xf8   : > { %v611_v2 = vadd.f32 %v595_v59, %v548_v56  ;;  %v655_v3 = vsel %vm635_vm14, %v2231_v54, 0.0  ;;  %v656_v39 = vsel %vm636_vm4, %v2231_v54, 0.0  ;;  %v432_v62 = vadd.s32 %v2177_v7, %v414_v27 }
  0xf9   : > { %v612_v61 = vadd.f32 %v596_v60, %v549_v1  ;;  %v433_v63 = vadd.s32 %v2177_v7, %v415_v45  ;;  %v434_v0 = vadd.s32 %v2177_v7, %v416_v46  ;;  %vm779_vm1 = vcmp.eq.s32.totalorder %v431_v57, %v2206_v40 }
  0xfa   : > { %v671_v6 = vadd.f32 %v655_v3, %v611_v2  ;;  %vm467_vm6 = vcmp.eq.s32.totalorder %v431_v57, %v2250_v58  ;;  %vm514_vm8 = vcmp.eq.s32.totalorder %v431_v57, %v2282_v5  ;;  %vm780_vm2 = vcmp.eq.s32.totalorder %v432_v62, %v2206_v40 }
  0xfb   : > { %v672_v8 = vadd.f32 %v656_v39, %v612_v61  ;;  %vm468_vm5 = vcmp.eq.s32.totalorder %v432_v62, %v2250_v58  ;;  %v487_v9 = vsel %vm467_vm6, %v2217_v47, 0.0  ;;  %vm1319_vm9 = vmpackc.low %vm780_vm2, %vm779_vm1  ;;  %vm515_vm15 = vcmp.eq.s32.totalorder %v432_v62, %v2282_v5 }
  0xfc   : > { %v488_v14 = vsel %vm468_vm5, %v2217_v47, 0.0  ;;  %v534_v7 = vsel %vm514_vm8, %v2220_v48, 0.0  ;;  %vm577_vm13 = vcmp.eq.s32.totalorder %v431_v57, %v2299_v11  ;;  %1320 = vmatpush3.bf16.msk.msra.mxu1 %vm1319_vm9, %v1793_v49  ;;  %v535_v16 = vsel %vm515_vm15, %v2220_v48, 0.0 }
  0xfd   : > { %v1292_v15 = vpack.c.bf16 %v672_v8, %v671_v6  ;;  %v550_v17 = vadd.f32 %v534_v7, %v487_v9  ;;  %vm578_vm12 = vcmp.eq.s32.totalorder %v432_v62, %v2299_v11  ;;  %v551_v18 = vadd.f32 %v535_v16, %v488_v14  ;;  %1321 = vmatprep.subr.bf16.mxu1 %v1790_v4 }
  0xfe   : > { %v597_v19 = vsel %vm577_vm13, %v2228_v53, 0.0  ;;  %v598_v21 = vsel %vm578_vm12, %v2228_v53, 0.0  ;;  %vm637_vm10 = vcmp.eq.s32.totalorder %v431_v57, %v2322_v22  ;;  %vm638_vm0 = vcmp.eq.s32.totalorder %v432_v62, %v2322_v22 }
  0xff   : > { %1293 = vmatpush3.bf16.msra.mxu0 %v1292_v15  ;;  %v613_v23 = vadd.f32 %v597_v19, %v550_v17  ;;  %v657_v24 = vsel %vm637_vm10, %v2231_v54, 0.0  ;;  %vm781_vm3 = vcmp.eq.s32.totalorder %v433_v63, %v2206_v40  ;;  %v614_v25 = vadd.f32 %v598_v21, %v551_v18 }
 0x100   : > { %1294 = vmatprep.subr.bf16.mxu0 %v1790_v4  ;;  %v658_v26 = vsel %vm638_vm0, %v2231_v54, 0.0  ;;  %vm782_vm7 = vcmp.eq.s32.totalorder %v434_v0, %v2206_v40  ;;  %vm469_vm11 = vcmp.eq.s32.totalorder %v433_v63, %v2250_v58  ;;  %vm470_vm4 = vcmp.eq.s32.totalorder %v434_v0, %v2250_v58  ;;  %v816_v40 = vld [vmem:[%s2168_s14] sm:$0x1] }
 0x101   : > { %v673_v28 = vadd.f32 %v657_v24, %v613_v23  ;;  %vm1322_vm14 = vmpackc.low %vm782_vm7, %vm781_vm3  ;;  %v489_v13 = vsel %vm469_vm11, %v2217_v47, 0.0  ;;  %vm516_vm1 = vcmp.eq.s32.totalorder %v433_v63, %v2282_v5  ;;  %v674_v29 = vadd.f32 %v658_v26, %v614_v25 }
 0x102   : > { %1323 = vmatpush3.bf16.msk.msra.mxu1 %vm1322_vm14, %v1793_v49  ;;  %v490_v31 = vsel %vm470_vm4, %v2217_v47, 0.0  ;;  %vm517_vm6 = vcmp.eq.s32.totalorder %v434_v0, %v2282_v5  ;;  %v536_v32 = vsel %vm516_vm1, %v2220_v48, 0.0  ;;  %vm579_vm8 = vcmp.eq.s32.totalorder %v433_v63, %v2299_v11 }
 0x103   : > { %v537_v33 = vsel %vm517_vm6, %v2220_v48, 0.0  ;;  %v552_v12 = vadd.f32 %v536_v32, %v489_v13  ;;  %vm580_vm2 = vcmp.eq.s32.totalorder %v434_v0, %v2299_v11  ;;  %v1295_v58 = vpack.c.bf16 %v674_v29, %v673_v28 }
 0x104   : > { %v553_v34 = vadd.f32 %v537_v33, %v490_v31  ;;  %v599_v20 = vsel %vm579_vm8, %v2228_v53, 0.0  ;;  %v600_v49 = vsel %vm580_vm2, %v2228_v53, 0.0  ;;  %vm639_vm5 = vcmp.eq.s32.totalorder %v433_v63, %v2322_v22  ;;  %v678_v53 = vld [vmem:[%s2713_s12] sm:$0xf] }
 0x105   : > { %v615_v47 = vadd.f32 %v599_v20, %v552_v12  ;;  %vm640_vm9 = vcmp.eq.s32.totalorder %v434_v0, %v2322_v22  ;;  %1274 = vmatmul.mubr.f32.vlgmr.msra.gmra.mrb[0].mxu1 %v816_v40  ;;  %1296 = vmatpush3.bf16.msra.mxu0 %v1295_v58  ;;  %v659_v5 = vsel %vm639_vm5, %v2231_v54, 0.0 }
 0x106   : > { %v616_v48 = vadd.f32 %v600_v49, %v553_v34  ;;  %v660_v35 = vsel %vm640_vm9, %v2231_v54, 0.0  ;;  %1297 = vmatprep.subr.bf16.mxu0 %v1790_v4 }
 0x107   : > { %v675_v11 = vadd.f32 %v659_v5, %v615_v47 }
 0x108   : > { %v676_v36 = vadd.f32 %v660_v35, %v616_v48 }
 0x10a   : > { %v1298_v37 = vpack.c.bf16 %v676_v36, %v675_v11 }
 0x10c   : > { %1299 = vmatpush3.bf16.msra.mxu0 %v1298_v37 }
 0x10f   : > { %1239 = vmatmul.mubr.f32.vlgmr.msra.gmra.mrb[0].mxu0 %v678_v53 }
 0x1d8   : > { %v883_v41 = vpop.f32.mrb[0].mxu1 }
 0x1d9   : > { %v887_v42 = vadd.f32 %v883_v41, %v815_v38  ;;  %v1275_v22 = vpop.f32.mrb[1].mxu1 }
 0x1db   : > { %888 = vst [vmem:[#allocation3] sm:$0x1] %v887_v42 }
 0x1df   : > { %892 = sbr.rel (%p1164_p12) target bundleno = 494 (0x1ee), region = 56 }
 0x1e2   : > { %v745_v27 = vpop.f32.mrb[0].mxu0  ;;  %v895_v54 = vld [vmem:[#allocation3] sm:$0x1] (!%p1164_p12) }
 0x1e3   : > { %v749_v30 = vadd.f32 %v745_v27, %v677_v43  ;;  %v1240_v44 = vpop.f32.mrb[1].mxu0  ;;  %896 = vst [vmem:[%s371_s15] sm:$0x1] (!%p1164_p12), %v895_v54 }
 0x1e5   : > { %750 = vst [vmem:[#allocation2] sm:$0xf] %v749_v30 }
 0x1ec   : > { %v893_v4 = vld [vmem:[#allocation2] sm:$0xf] }
 0x1ed   : > { %894 = vst [vmem:[%s2170_s3] sm:$0xf] %v893_v4 }
 0x1ee PF: > { %s2714_s24 = sld [smem:[#allocation21_spill]]  ;;  %s2715_s7 = sld [smem:[#allocation20_spill]] }
 0x1ef   : > { %s917_s6 = sshll.u32 %s2170_s3, 4  ;;  %s2716_s5 = sld [smem:[#allocation33_spill]]  ;;  %s2517_s6 = int_to_ptr.vmem [resolvable:$true] %s917_s6 }
 0x1f0   : > { %s898_s21 = scalar_lea.sflag [#allocation6], %s2158_s10  ;;  %s1586_s14 = scalar_lea.vmem %s2517_s6, 64 }
 0x1f1   : > { %p1587_p0 = scmp.ne.s32.totalorder %s2517_s6, %s1586_s14  ;;  %p2717_p13 = scmp.ne.s32.totalorder %s2686_s4, 0 }
 0x1f2   : > { %s1794_s25 = smov [#allocation10]  }
 0x1f3   : > { %p1588_p11 = pnand %p1587_p0, %p2717_p13  ;;  %s1590_s13 = sshll.u32 %s1794_s25, 4  ;;  %s1591_s13 = int_to_ptr.vmem [resolvable:$false] %s1590_s13 }
 0x1f4   : > { %s1166_s11 = sshll.u32 %s2714_s24, 1  ;;  %s1592_s3 = scalar_lea.vmem %s1591_s13, 128 }
 0x1f5   : > { %s2513_s9 = sadd.s32 %s2715_s7, %s1166_s11  ;;  %p1589_p7 = pneg %p1588_p11 }
 0x1f6   : > { %s1167_s29 = sshll.u32 %s2513_s9, 6  ;;  %p1593_p8 = scmp.lt.s32.totalorder %s2517_s6, %s1591_s13 }
 0x1f7   : > { %s915_s22 = scalar_lea.hbm %s2716_s5, %s1167_s29  ;;  %p1594_p4 = scmp.lt.s32.totalorder %s1592_s3, %s1586_s14 }
 0x1f9   : > { %p1595_p10 = por %p1594_p4, %p1593_p8 }
 0x1fb   : > { %p1596_p5 = pnand %p1595_p10, %p1589_p7 }
 0x1fd   : > { %1599 = shalt.err (!%p1596_p5)
}
 0x1fe   : > { %s1600_s12 = scalar_lea.hbm %s915_s22, 64  ;;  %s1604_s11 = scalar_lea.hbm %s2716_s5, 256 }
 0x1ff   : > { %p1601_p1 = scmp.ne.s32.totalorder %s915_s22, %s1600_s12  ;;  %p1605_p6 = scmp.lt.u32.totalorder %s915_s22, %s2716_s5 }
 0x200   : > { %p1606_p3 = scmp.lt.u32.totalorder %s1604_s11, %s1600_s12  ;;  %p1608_p0 = scmp.lt.u32.totalorder %s1600_s12, %s915_s22 }
 0x201   : > { %p1602_p9 = pnand %p1601_p1, %p2717_p13 }
 0x202   : > { %p1607_p12 = por %p1606_p3, %p1605_p6 }
 0x203   : > { %p1603_p2 = pneg %p1602_p9 }
 0x204   : > { %p1609_p11 = por %p1608_p0, %p1607_p12 }
 0x206   : > { %p1610_p7 = pnand %p1609_p11, %p1603_p2 }
 0x208   : > { %1613 = shalt.err (!%p1610_p7)
}
 0x209   : > { %1340 = dma.vmem_to_hbm [thread:$0]  (%p2717_p13), %s2517_s6, 64, %s915_s22, %s898_s21  }
 0x20a   : > { %s1169_s27 = sshll.u32 %s2513_s9, 4  ;;  %s932_s14 = sshll.u32 %s371_s15, 4  ;;  %s933_s14 = int_to_ptr.vmem [resolvable:$true] %s932_s14 }
 0x20b   : > { %s2718_s3 = sld [smem:[#allocation34_spill]]  ;;  %s903_s12 = scalar_lea.sflag [#allocation12], %s2158_s10 }
 0x20c   : > { %s1614_s7 = scalar_lea.vmem %s933_s14, 16  ;;  %s1795_s11 = smov [#allocation11]  }
 0x20d   : > { %p1615_p8 = scmp.ne.s32.totalorder %s933_s14, %s1614_s7  ;;  %s1618_s29 = sshll.u32 %s1795_s11, 4  ;;  %s1619_s29 = int_to_ptr.vmem [resolvable:$false] %s1618_s29 }
 0x20e   : > { %s1620_s1 = scalar_lea.vmem %s1619_s29, 32  ;;  %p1621_p5 = scmp.lt.s32.totalorder %s933_s14, %s1619_s29 }
 0x20f   : > { %p1616_p4 = pnand %p1615_p8, %p2717_p13  ;;  %p1622_p1 = scmp.lt.s32.totalorder %s1620_s1, %s1614_s7 }
 0x211   : > { %s2545_s24 = scalar_lea.hbm %s2718_s3, %s1169_s27  ;;  %p1617_p10 = pneg %p1616_p4 }
 0x212   : > { %p1623_p9 = por %p1622_p1, %p1621_p5 }
 0x214   : > { %p1624_p2 = pnand %p1623_p9, %p1617_p10 }
 0x216   : > { %1627 = shalt.err (!%p1624_p2)
}
 0x217   : > { %s1628_s10 = scalar_lea.hbm %s2545_s24, 16  ;;  %s1632_s6 = scalar_lea.hbm %s2718_s3, 64 }
 0x218   : > { %p1629_p6 = scmp.ne.s32.totalorder %s2545_s24, %s1628_s10  ;;  %p1633_p0 = scmp.lt.u32.totalorder %s2545_s24, %s2718_s3 }
 0x219   : > { %p1634_p11 = scmp.lt.u32.totalorder %s1632_s6, %s1628_s10  ;;  %p1636_p8 = scmp.lt.u32.totalorder %s1628_s10, %s2545_s24 }
 0x21a   : > { %p1630_p3 = pnand %p1629_p6, %p2717_p13 }
 0x21b   : > { %p1635_p7 = por %p1634_p11, %p1633_p0 }
 0x21c   : > { %p1631_p12 = pneg %p1630_p3 }
 0x21d   : > { %p1637_p4 = por %p1636_p8, %p1635_p7 }
 0x21f   : > { %p1638_p10 = pnand %p1637_p4, %p1631_p12 }
 0x221   : > { %1641 = shalt.err (!%p1638_p10)
}
 0x222   : > { %1341 = dma.vmem_to_hbm [thread:$0]  (%p2717_p13), %s933_s14, 16, %s2545_s24, %s903_s12  }
 0x223 PF: > { %p1362_p5 = scmp.ge.s32.totalorder %s1784_s8, 2  ;;  %s944_s27 = sand.u32 1, %s1724_s18  }
 0x224   : > { %p2719_p1 = scmp.ne.s32.totalorder %s2689_s28, 0  ;;  %s945_s25 = scalar_lea.sflag [#allocation6], %s944_s27 }
 0x226   : > { %p1355_p9 = pnand %p1362_p5, %p2719_p1 }
 0x228   : > { %1715 = dma.done.wait (!%p1355_p9), %s945_s25, 64  }
 0x229   : > { %1717 = vsyncadd (!%p1355_p9), %s945_s25, 4294967232  ;;  %s954_s13 = scalar_lea.sflag [#allocation12], %s944_s27 }
 0x22a   : > { %1719 = dma.done.wait (!%p1355_p9), %s954_s13, 16  }
 0x22b   : > { %1721 = vsyncadd (!%p1355_p9), %s954_s13, 4294967280  ;;  %s28_s8 = sadd.s32 1, %s1784_s8   ;;  %s2721_s21 = sld [smem:[#allocation17_spill]] }
 0x22c   : > { %p2570_p2 = scmp.ge.s32.totalorder %s28_s8, 10   ;;  %s2722_s24 = sld [smem:[#allocation18_spill]] }
 0x22d   : > { %s2723_s28 = sld [smem:[#allocation30_spill]]  ;;  %s2724_s14 = sld [smem:[#allocation22_spill]] }
 0x22e   : > { %s2725_s29 = sld [smem:[#allocation23_spill]]  ;;  %s2726_s12 = sld [smem:[#allocation24_spill]] }
 0x22f   : > { %s2727_s6 = sld [smem:[#allocation27_spill]]  ;;  %s2728_s7 = sld [smem:[#allocation29_spill]] }
 0x230   : > { %s2729_s18 = smov %s1728_s19  ;;  %s2730_s19 = smov %s1732_s20 }
 0x231   : > { %s2731_s20 = smov %s2059_s17  ;;  %s2732_s22 = smov %s1744_s23 }
 0x232   : > { %s2733_s23 = smov %s2056_s16  ;;  %s2734_s25 = smov %s1756_s26 }
 0x233   : > { %s2735_s26 = smov %s2723_s28  ;;  %s2736_s27 = smov %s1772_s30 }
 0x234   : > { %s2737_s28 = smov %s2724_s14  ;;  %s2738_s30 = smov %s2726_s12 }
 0x235   :  { %27 = sbr.rel (!%p2570_p2) target bundleno = 20 (0x14), region = 133 }
 0x23c   :  { %958 = vsyncpa [#allocation5], 1 }
 0x23d   :  { %960 = vsyncpa [#allocation5 + $0x1], 1 }
 0x23e   :  { %961 = vsyncpa [#allocation8], 1 }
 0x23f   :  { %963 = vsyncpa [#allocation8 + $0x1], 1 }
 0x240   :  { %964 = vsyncpa [#allocation6], 1 }
 0x241   :  { %966 = vsyncpa [#allocation6 + $0x1], 1 }
 0x242   :  { %967 = vsyncpa [#allocation12], 1 }
 0x243   :  { %969 = vsyncpa [#allocation12 + $0x1], 1 }

</bundles_post_ra>
